<compile_context>
chip_gen: v6e
topology: v6e:2x2x1
jax: 0.10.0
libtpu: 0.0.40
codegen_flags: <defaults>
</compile_context>

<pallas_src>
import jax
import jax.numpy as jnp
from jax.experimental import pallas as pl
from jax.experimental.pallas import tpu as pltpu

IN_F, H1_F, H2_F, OUT_F = 720, 512, 64, 17   # logical (PyTorch) sizes
H2_P, OUT_P = 128, 128                       # 128-lane padded hidden2 / output widths


def _round_up(x, m):
    return (x + m - 1) // m * m


def _bf16_epilogue_supported():
    """bf16 VPU ALUs exist on v6e/v7x; keep f32 elementwise on v5e and older."""
    try:
        kind = jax.devices()[0].device_kind.lower()
    except Exception:
        return False
    return any(tag in kind for tag in ("v6", "v7", "7x"))


def _make_kernel(use_bf16_epilogue):
    def kernel(x_ref, w1_ref, b1_ref, w2_ref, b2_ref, w3_ref, b3_ref, o_ref):
        # GRL forward is identity; cast the f32 input tile to bf16 for the MXU in-kernel.
        x = x_ref[...].astype(jnp.bfloat16)

        acc1 = jnp.dot(x, w1_ref[...], preferred_element_type=jnp.float32)
        if use_bf16_epilogue:
            h1 = jnp.maximum(acc1.astype(jnp.bfloat16) + b1_ref[...].astype(jnp.bfloat16), 0)
        else:
            h1 = jnp.maximum(acc1 + b1_ref[...], 0.0).astype(jnp.bfloat16)

        acc2 = jnp.dot(h1, w2_ref[...], preferred_element_type=jnp.float32)
        if use_bf16_epilogue:
            h2 = jnp.maximum(acc2.astype(jnp.bfloat16) + b2_ref[...].astype(jnp.bfloat16), 0)
        else:
            h2 = jnp.maximum(acc2 + b2_ref[...], 0.0).astype(jnp.bfloat16)

        out = jnp.dot(h2, w3_ref[...], preferred_element_type=jnp.float32) + b3_ref[...]
        o_ref[...] = out  # lane-dense (block_b, 128) f32 store

    return kernel


def _pick_block_b(B, block_b):
    block_b = max(8, min(block_b, _round_up(B, 8)))
    # Keep >= 2 grid steps so dimension_semantics=("parallel",) can shard across
    # v7x's two TensorCores; the extra ~0.35 us step is negligible on v5e/v6e.
    if B >= 16 and pl.cdiv(B, block_b) < 2:
        block_b = _round_up(pl.cdiv(B, 2), 8)
    return block_b


def discriminator_forward(x, params, *, block_b=1024, slice_output=True):
    """x: (B, 720) float32.  params: padded bf16/f32 params from prepare_params().
    Returns (B, 17) f32 (or the lane-dense (B, 128) slab if slice_output=False)."""
    B = x.shape[0]
    block_b = _pick_block_b(B, block_b)
    grid = (pl.cdiv(B, block_b),)

    w1, b1, w2, b2, w3, b3 = (params[k] for k in ("w1", "b1", "w2", "b2", "w3", "b3"))
    use_bf16_epilogue = _bf16_epilogue_supported()

    # Weights / biases stay VMEM-resident: full-array blocks, constant index map.
    full = lambda a: pl.BlockSpec(a.shape, lambda i: (0,) * a.ndim)

    flops = 2 * B * (IN_F * H1_F + H1_F * H2_P + H2_P * OUT_P)
    bytes_accessed = (x.size * x.dtype.itemsize
                      + sum(p.size * p.dtype.itemsize for p in (w1, b1, w2, b2, w3, b3))
                      + B * OUT_P * 4)

    out = pl.pallas_call(
        _make_kernel(use_bf16_epilogue),
        out_shape=jax.ShapeDtypeStruct((B, OUT_P), jnp.float32),
        grid=grid,
        in_specs=[pl.BlockSpec((block_b, IN_F), lambda i: (i, 0)),  # last dim == full array dim
                  full(w1), full(b1), full(w2), full(b2), full(w3), full(b3)],
        out_specs=pl.BlockSpec((block_b, OUT_P), lambda i: (i, 0)),
        compiler_params=pltpu.CompilerParams(
            dimension_semantics=("parallel",),
            vmem_limit_bytes=32 * 1024 * 1024),
        cost_estimate=pl.CostEstimate(flops=flops, transcendentals=0,
                                      bytes_accessed=bytes_accessed),
    )(x, w1, b1, w2, b2, w3, b3)
    return out[:, :OUT_F] if slice_output else out


def init_params(key):
    """nn.Linear-style init for fc1(720->512), fc2(512->64), fc3(64->17), stored (in, out)."""
    ks = jax.random.split(key, 6)

    def linear(kw, kb, fan_in, fan_out):
        bound = 1.0 / jnp.sqrt(fan_in)
        w = jax.random.uniform(kw, (fan_in, fan_out), jnp.float32, -bound, bound)
        b = jax.random.uniform(kb, (fan_out,), jnp.float32, -bound, bound)
        return w, b

    w1, b1 = linear(ks[0], ks[1], IN_F, H1_F)
    w2, b2 = linear(ks[2], ks[3], H1_F, H2_F)
    w3, b3 = linear(ks[4], ks[5], H2_F, OUT_F)
    return {"w1": w1, "b1": b1, "w2": w2, "b2": b2, "w3": w3, "b3": b3}


def prepare_params(raw):
    """w1 stays (720, 512); hidden2/out dims zero-padded to 128.  Weights bf16, biases f32 (1, N)."""
    def pad_w(w, rows, cols):
        out = jnp.zeros((rows, cols), jnp.float32).at[: w.shape[0], : w.shape[1]].set(w)
        return out.astype(jnp.bfloat16)

    def pad_b(b, cols):
        return jnp.zeros((1, cols), jnp.float32).at[0, : b.shape[0]].set(b)

    return {
        "w1": raw["w1"].astype(jnp.bfloat16),          # (720, 512): ragged K handled in-kernel
        "b1": raw["b1"].reshape(1, H1_F).astype(jnp.float32),
        "w2": pad_w(raw["w2"], H1_F, H2_P), "b2": pad_b(raw["b2"], H2_P),
        "w3": pad_w(raw["w3"], H2_P, OUT_P), "b3": pad_b(raw["b3"], OUT_P),
    }


def reference_forward(x, raw, *, use_bf16_epilogue=False):
    """Pure-JAX reference with the same numerics as the kernel (bf16 operands, f32 MXU acc,
    generation-matched epilogue precision) on the unpadded weights."""
    def hidden(h_bf16, w, b):
        acc = jnp.dot(h_bf16, w.astype(jnp.bfloat16), preferred_element_type=jnp.float32)
        if use_bf16_epilogue:
            return jnp.maximum(acc.astype(jnp.bfloat16) + b.astype(jnp.bfloat16), 0)
        return jnp.maximum(acc + b, 0.0).astype(jnp.bfloat16)

    h1 = hidden(x.astype(jnp.bfloat16), raw["w1"], raw["b1"])
    h2 = hidden(h1, raw["w2"], raw["b2"])
    return jnp.dot(h2, raw["w3"].astype(jnp.bfloat16),
                   preferred_element_type=jnp.float32) + raw["b3"]


if __name__ == "__main__":
    key = jax.random.PRNGKey(0)
    k_x, k_p = jax.random.split(key)

    # Small batch, deliberately not a multiple of the block size (exercises the ragged tail
    # block and the >=2-step parallel grid split).
    batch = 200
    x = jax.random.normal(k_x, (batch, IN_F), jnp.float32)

    raw = init_params(k_p)
    params = prepare_params(raw)

    fwd = jax.jit(discriminator_forward)
    out = jax.block_until_ready(fwd(x, params))

    ref = reference_forward(x, raw, use_bf16_epilogue=_bf16_epilogue_supported())
    assert out.shape == (batch, OUT_F)
    max_err = jnp.max(jnp.abs(out - ref))
    assert jnp.allclose(out, ref, atol=5e-3, rtol=5e-3), f"max abs err {max_err}"

    # TODO(synk): GRLFunction.backward (gradient-reversal coefficient) is autograd-only;
    # the forward pass implemented here is exact (GRL forward is identity).
    print("KERNEL_OK")
</pallas_src>

<mosaic_0001>
module attributes {stable_mosaic.version = 11 : i64} {
  func.func @kernel(%arg0: i32, %arg1: memref<104x720xf32, #tpu.memory_space<vmem>>, %arg2: memref<720x512xbf16, #tpu.memory_space<vmem>>, %arg3: memref<1x512xf32, #tpu.memory_space<vmem>>, %arg4: memref<512x128xbf16, #tpu.memory_space<vmem>>, %arg5: memref<1x128xf32, #tpu.memory_space<vmem>>, %arg6: memref<128x128xbf16, #tpu.memory_space<vmem>>, %arg7: memref<1x128xf32, #tpu.memory_space<vmem>>, %arg8: memref<104x128xf32, #tpu.memory_space<vmem>>) attributes {dimension_semantics = [#tpu.dimension_semantics<parallel>], iteration_bounds = array<i64: 2>, scalar_prefetch = 0 : i64, scratch_operands = 0 : i64, tpu.core_type = #tpu.core_type<tc>, window_params = [{transform_indices = @transform_0, window_bounds = array<i64: 104, 720>}, {pipeline_mode = #tpu.pipeline_mode<synchronous>, transform_indices = @transform_1, window_bounds = array<i64: 720, 512>}, {pipeline_mode = #tpu.pipeline_mode<synchronous>, transform_indices = @transform_2, window_bounds = array<i64: 1, 512>}, {pipeline_mode = #tpu.pipeline_mode<synchronous>, transform_indices = @transform_3, window_bounds = array<i64: 512, 128>}, {pipeline_mode = #tpu.pipeline_mode<synchronous>, transform_indices = @transform_4, window_bounds = array<i64: 1, 128>}, {pipeline_mode = #tpu.pipeline_mode<synchronous>, transform_indices = @transform_5, window_bounds = array<i64: 128, 128>}, {pipeline_mode = #tpu.pipeline_mode<synchronous>, transform_indices = @transform_6, window_bounds = array<i64: 1, 128>}, {transform_indices = @transform_7, window_bounds = array<i64: 104, 128>}]} {
    %c0 = arith.constant 0 : index
    %c0_0 = arith.constant 0 : index
    %0 = vector.load %arg1[%c0, %c0_0] : memref<104x720xf32, #tpu.memory_space<vmem>>, vector<104x720xf32>
    %1 = arith.truncf %0 : vector<104x720xf32> to vector<104x720xbf16>
    %c0_1 = arith.constant 0 : index
    %c0_2 = arith.constant 0 : index
    %2 = vector.load %arg2[%c0_1, %c0_2] : memref<720x512xbf16, #tpu.memory_space<vmem>>, vector<720x512xbf16>
    %cst = arith.constant dense<0.000000e+00> : vector<104x512xf32>
    %3 = tpu.matmul %1, %2, %cst {dimension_numbers = #tpu.dot_dimension_numbers<[1], [0], [0], [1], [0, 0, 1, 1], [], []>} : vector<104x720xbf16>, vector<720x512xbf16>, vector<104x512xf32> -> vector<104x512xf32>
    %c0_3 = arith.constant 0 : index
    %c0_4 = arith.constant 0 : index
    %4 = vector.load %arg3[%c0_3, %c0_4] : memref<1x512xf32, #tpu.memory_space<vmem>>, vector<1x512xf32>
    %5 = vector.broadcast %4 : vector<1x512xf32> to vector<104x512xf32>
    %6 = arith.addf %3, %5 : vector<104x512xf32>
    %cst_5 = arith.constant 0.000000e+00 : f32
    %7 = vector.broadcast %cst_5 : f32 to vector<104x512xf32>
    %8 = arith.maximumf %6, %7 : vector<104x512xf32>
    %9 = arith.truncf %8 : vector<104x512xf32> to vector<104x512xbf16>
    %c0_6 = arith.constant 0 : index
    %c0_7 = arith.constant 0 : index
    %10 = vector.load %arg4[%c0_6, %c0_7] : memref<512x128xbf16, #tpu.memory_space<vmem>>, vector<512x128xbf16>
    %cst_8 = arith.constant dense<0.000000e+00> : vector<104x128xf32>
    %11 = tpu.matmul %9, %10, %cst_8 {dimension_numbers = #tpu.dot_dimension_numbers<[1], [0], [0], [1], [0, 0, 1, 1], [], []>} : vector<104x512xbf16>, vector<512x128xbf16>, vector<104x128xf32> -> vector<104x128xf32>
    %c0_9 = arith.constant 0 : index
    %c0_10 = arith.constant 0 : index
    %12 = vector.load %arg5[%c0_9, %c0_10] : memref<1x128xf32, #tpu.memory_space<vmem>>, vector<1x128xf32>
    %13 = vector.broadcast %12 : vector<1x128xf32> to vector<104x128xf32>
    %14 = arith.addf %11, %13 : vector<104x128xf32>
    %cst_11 = arith.constant 0.000000e+00 : f32
    %15 = vector.broadcast %cst_11 : f32 to vector<104x128xf32>
    %16 = arith.maximumf %14, %15 : vector<104x128xf32>
    %17 = arith.truncf %16 : vector<104x128xf32> to vector<104x128xbf16>
    %c0_12 = arith.constant 0 : index
    %c0_13 = arith.constant 0 : index
    %18 = vector.load %arg6[%c0_12, %c0_13] : memref<128x128xbf16, #tpu.memory_space<vmem>>, vector<128x128xbf16>
    %cst_14 = arith.constant dense<0.000000e+00> : vector<104x128xf32>
    %19 = tpu.matmul %17, %18, %cst_14 {dimension_numbers = #tpu.dot_dimension_numbers<[1], [0], [0], [1], [0, 0, 1, 1], [], []>} : vector<104x128xbf16>, vector<128x128xbf16>, vector<104x128xf32> -> vector<104x128xf32>
    %c0_15 = arith.constant 0 : index
    %c0_16 = arith.constant 0 : index
    %20 = vector.load %arg7[%c0_15, %c0_16] : memref<1x128xf32, #tpu.memory_space<vmem>>, vector<1x128xf32>
    %21 = vector.broadcast %20 : vector<1x128xf32> to vector<104x128xf32>
    %22 = arith.addf %19, %21 : vector<104x128xf32>
    %c0_17 = arith.constant 0 : index
    %c0_18 = arith.constant 0 : index
    %23 = vector.load %arg8[%c0_17, %c0_18] : memref<104x128xf32, #tpu.memory_space<vmem>>, vector<104x128xf32>
    tpu.vector_store %arg8[%c0_17, %c0_18], %22 {strides = array<i32>} : memref<104x128xf32, #tpu.memory_space<vmem>>, vector<104x128xf32>,
    return
  }
  func.func @transform_0(%arg0: i32) -> (i32, i32) {
    %c0_i32 = arith.constant 0 : i32
    %c0_i32_0 = arith.constant 0 : i32
    return %arg0, %c0_i32 : i32, i32
  }
  func.func @transform_1(%arg0: i32) -> (i32, i32) {
    %c0_i32 = arith.constant 0 : i32
    %c0_i32_0 = arith.constant 0 : i32
    %c0_i32_1 = arith.constant 0 : i32
    return %c0_i32, %c0_i32_0 : i32, i32
  }
  func.func @transform_2(%arg0: i32) -> (i32, i32) {
    %c0_i32 = arith.constant 0 : i32
    %c0_i32_0 = arith.constant 0 : i32
    %c0_i32_1 = arith.constant 0 : i32
    return %c0_i32, %c0_i32_0 : i32, i32
  }
  func.func @transform_3(%arg0: i32) -> (i32, i32) {
    %c0_i32 = arith.constant 0 : i32
    %c0_i32_0 = arith.constant 0 : i32
    %c0_i32_1 = arith.constant 0 : i32
    return %c0_i32, %c0_i32_0 : i32, i32
  }
  func.func @transform_4(%arg0: i32) -> (i32, i32) {
    %c0_i32 = arith.constant 0 : i32
    %c0_i32_0 = arith.constant 0 : i32
    %c0_i32_1 = arith.constant 0 : i32
    return %c0_i32, %c0_i32_0 : i32, i32
  }
  func.func @transform_5(%arg0: i32) -> (i32, i32) {
    %c0_i32 = arith.constant 0 : i32
    %c0_i32_0 = arith.constant 0 : i32
    %c0_i32_1 = arith.constant 0 : i32
    return %c0_i32, %c0_i32_0 : i32, i32
  }
  func.func @transform_6(%arg0: i32) -> (i32, i32) {
    %c0_i32 = arith.constant 0 : i32
    %c0_i32_0 = arith.constant 0 : i32
    %c0_i32_1 = arith.constant 0 : i32
    return %c0_i32, %c0_i32_0 : i32, i32
  }
  func.func @transform_7(%arg0: i32) -> (i32, i32) {
    %c0_i32 = arith.constant 0 : i32
    %c0_i32_0 = arith.constant 0 : i32
    return %arg0, %c0_i32 : i32, i32
  }
}

</mosaic_0001>

<bundles_post_ra>
// kernel: discriminator_forward.1
= control target key start
LH: loop header
LB: loop body
LE: loop exit
PB: predicated region body
PF: predicated region fallthrough
CT: control target
= control target key end

     0   :  { %12 = vsyncpa [#allocation3], 0  ;;  %s5351_s0 = inlined_call_operand.hbm [shape: f32[200,720], index: 0, kind: input, shape index: {}]   ;;  %s5352_s1 = inlined_call_operand.hbm [shape: bf16[720,512], index: 1, kind: input, shape index: {}]   ;;  %s5353_s2 = inlined_call_operand.hbm [shape: f32[1,512], index: 2, kind: input, shape index: {}]   ;;  %s5354_s3 = inlined_call_operand.hbm [shape: bf16[512,128], index: 3, kind: input, shape index: {}]   ;;  %s5355_s4 = inlined_call_operand.vmem [shape: f32[1,128], index: 4, kind: input, shape index: {}]   ;;  %s5356_s5 = inlined_call_operand.hbm [shape: bf16[128,128], index: 5, kind: input, shape index: {}]   ;;  %s5357_s6 = inlined_call_operand.vmem [shape: f32[1,128], index: 6, kind: input, shape index: {}]   ;;  %s5358_s7 = inlined_call_operand.vmem [shape: f32[200,128], index: 7, kind: output, shape index: {}]  }
   0x1   :  { %14 = vsyncpa [#allocation3 + $0x1], 0 }
   0x2   :  { %15 = vsyncpa [#allocation5], 0 }
   0x3   :  { %16 = vsyncpa [#allocation8], 0  ;;  %s4459_s24 = smov 0   ;;  %s4461_s25 = smov 0  }
   0x4   :  { %s4463_s26 = smov 0   ;;  %s4465_s27 = smov 0  }
   0x5 LB: > { %s4478_s28 = sadd.s32 4294967295, %s4372_s27   ;;  %s4481_s29 = sadd.s32 1, %s4372_s27   ;;  %s4372_s27 = sphi %s4465_s27, %s5397_s27   ;;  %s4368_s26 = sphi %s4463_s26, %s5396_s26   ;;  %s4364_s25 = sphi %s4461_s25, %s5395_s25   ;;  %s4360_s24 = sphi %s4459_s24, %s5394_s24  }
   0x6   : > { %s26_s30 = ssub.s32 %s4372_s27, %s4481_s29  ;;  %s29_s8 = sadd.s32 1, %s4368_s26 }
   0x7   : > { %p27_p0 = scmp.eq.s32.totalorder %s26_s30, 0  ;;  %p36_p1 = scmp.ne.s32.totalorder %s4368_s26, %s4364_s25 }
   0x8   : > { %p37_p2 = scmp.eq.s32.totalorder %s4372_s27, 0  ;;  %p42_p3 = scmp.ne.s32.totalorder %s4364_s25, %s4360_s24 }
   0x9   : > { %s4491_s9 = scalar_select %p27_p0, %s4368_s26, %s29_s8  }
   0xa   : > { %p4493_p4 = por %p37_p2, %p36_p1  ;;  %p5359_p5 = scmp.eq.s32.totalorder %s4478_s28, 0 }
   0xb   : > { %p192_p6 = scmp.eq.s32.totalorder %s4478_s28, 1  ;;  %p3246_p7 = scmp.ge.s32.totalorder %s4372_s27, 1 }
   0xc   : > { %s5366_s10 = scalar_select %p4493_p4, 1, 0 }
   0xd   : > { %p4502_p8 = por %p5359_p5, %p42_p3  ;;  %p205_p9 = scmp.lt.s32.totalorder %s4372_s27, 3 }
   0xe   : > { %p4507_p10 = por %p192_p6, %p36_p1  ;;  %s4406_s14 = smov [#allocation4]  }
   0xf   : > { %s5367_s11 = scalar_select %p4502_p8, 1, 0 }
  0x10   : > { %s5368_s12 = scalar_select %p4507_p10, 1, 0 }
  0x11   : > { %p4511_p11 = pnand %p3246_p7, %p205_p9  ;;  %s217_s15 = sshll.u32 %s4406_s14, 4  ;;  %s218_s15 = int_to_ptr.vmem [resolvable:$true] %s217_s15 }
  0x12   : > { %s4407_s17 = smov [#allocation7]   ;;  %s4179_s19 = scalar_lea.vmem %s218_s15, 23040 }
  0x13   : > { %s5369_s13 = scalar_select %p4511_p11, 1, 0 }
  0x14   : > { %p3723_p12 = pneg %p4511_p11  ;;  %s241_s18 = sshll.u32 %s4407_s17, 4  ;;  %s242_s18 = int_to_ptr.vmem [resolvable:$true] %s241_s18 }
  0x15   : > { %p4180_p1 = scmp.ne.s32.totalorder %s218_s15, %s4179_s19  ;;  %p4187_p6 = scmp.lt.s32.totalorder %s218_s15, %s218_s15 }
  0x16   : > { %p4519_p13 = pnand %p3723_p12, %p5359_p5  ;;  %p4188_p7 = scmp.lt.s32.totalorder %s4179_s19, %s4179_s19 }
  0x18   : > { %p4170_p0 = pneg %p4519_p13  ;;  %p4189_p9 = por %p4188_p7, %p4187_p6 }
  0x1a   : > { %p4182_p2 = pnand %p4180_p1, %p4170_p0 }
  0x1c   : > { %p4183_p3 = pneg %p4182_p2 }
  0x1e   : > { %p4190_p12 = pnand %p4189_p9, %p4183_p3 }
  0x20   : > { %4193 = shalt.err (!%p4190_p12)
}
  0x21   : > { %s4408_s20 = smov 256   ;;  %s4409_s21 = smov 16  }
  0x22   : > { %3726 = dma.hbm_to_vmem [thread:$0]  (!%p4519_p13), %s5352_s1, 23040, %s218_s15, [#allocation5], %s4408_s20, %s4408_s20, %s4409_s21  }
  0x23   : > { %s4205_s24 = scalar_lea.vmem %s242_s18, 4096  ;;  %p4213_p10 = scmp.lt.s32.totalorder %s242_s18, %s242_s18 }
  0x24   : > { %p4206_p5 = scmp.ne.s32.totalorder %s242_s18, %s4205_s24  ;;  %p4214_p8 = scmp.lt.s32.totalorder %s4205_s24, %s4205_s24 }
  0x26   : > { %p4208_p1 = pnand %p4206_p5, %p4170_p0  ;;  %p4215_p6 = por %p4214_p8, %p4213_p10 }
  0x28   : > { %p4209_p2 = pneg %p4208_p1 }
  0x2a   : > { %p4216_p3 = pnand %p4215_p6, %p4209_p2 }
  0x2c   : > { %4219 = shalt.err (!%p4216_p3)
}
  0x2d   : > { %s4410_s30 = smov 64   ;;  %s4411_s8 = smov 4  }
  0x2e   : > { %3732 = dma.hbm_to_vmem [thread:$0]  (!%p4519_p13), %s5354_s3, 4096, %s242_s18, [#allocation8], %s4410_s30, %s4410_s30, %s4411_s8  }
  0x2f   : > { %s4412_s17 = smov [#allocation6]   ;;  %s4413_s20 = smov [#allocation9]  }
  0x30   : > { %s231_s19 = sshll.u32 %s4412_s17, 4  ;;  %s257_s21 = sshll.u32 %s4413_s20, 4  ;;  %s232_s19 = int_to_ptr.vmem [resolvable:$true] %s231_s19  ;;  %s258_s21 = int_to_ptr.vmem [resolvable:$true] %s257_s21 }
  0x31   : > { %s4231_s22 = scalar_lea.vmem %s232_s19, 64  ;;  %p4239_p7 = scmp.lt.s32.totalorder %s232_s19, %s232_s19 }
  0x32   : > { %p4232_p5 = scmp.ne.s32.totalorder %s232_s19, %s4231_s22  ;;  %p4240_p9 = scmp.lt.s32.totalorder %s4231_s22, %s4231_s22 }
  0x34   : > { %p4234_p8 = pnand %p4232_p5, %p4170_p0  ;;  %p4241_p12 = por %p4240_p9, %p4239_p7 }
  0x36   : > { %p4235_p10 = pneg %p4234_p8 }
  0x38   : > { %p4242_p1 = pnand %p4241_p12, %p4235_p10 }
  0x3a   : > { %4245 = shalt.err (!%p4242_p1)
}
  0x3b   : > { %3729 = dma.hbm_to_vmem [thread:$0]  (!%p4519_p13), %s5353_s2, 64, %s232_s19, [#allocation5]  }
  0x3c   : > { %s4257_s24 = scalar_lea.vmem %s258_s21, 1024  ;;  %p4265_p5 = scmp.lt.s32.totalorder %s258_s21, %s258_s21 }
  0x3d   : > { %p4258_p2 = scmp.ne.s32.totalorder %s258_s21, %s4257_s24  ;;  %p4266_p8 = scmp.lt.s32.totalorder %s4257_s24, %s4257_s24 }
  0x3f   : > { %p4260_p6 = pnand %p4258_p2, %p4170_p0  ;;  %p4267_p11 = por %p4266_p8, %p4265_p5 }
  0x41   : > { %p4261_p3 = pneg %p4260_p6 }
  0x43   : > { %p4268_p4 = pnand %p4267_p11, %p4261_p3 }
  0x45   : > { %4271 = shalt.err (!%p4268_p4)
}
  0x46   : > { %3735 = dma.hbm_to_vmem [thread:$0]  (!%p4519_p13), %s5356_s5, 1024, %s258_s21, [#allocation8], %s4410_s30, %s4410_s30, %s4411_s8  }
  0x47   : > { %p3251_p10 = scmp.ge.s32.totalorder %s4372_s27, 2 }
  0x48   : > { %p5371_p0 = scmp.ne.s32.totalorder (!%p3251_p10), %s5366_s10, 0 }
  0x49   : > { %270 = sbr.rel (%p3251_p10) target bundleno = 113 (0x71), region = 40 }
  0x4e   : > { %273 = sbr.rel (!%p5371_p0) target bundleno = 113 (0x71), region = 44  ;;  %s274_s17 = sand.u32 (%p5371_p0), 1, %s4368_s26  }
  0x4f   : > { %s279_s19 = smul.u32 (%p5371_p0), 13, %s4372_s27  ;;  %s4571_s23 = scalar_lea.sflag (%p5371_p0), [#allocation3], %s274_s17 }
  0x50   : > { %s3702_s20 = smul.u32 (%p5371_p0), 624, %s274_s17 }
  0x51   : > { %s280_s22 = ssub.s32 (%p5371_p0), 25, %s279_s19 }
  0x52   : > { %p281_p4 = scmp.lt.s32.totalorder (%p5371_p0), %s280_s22, 13  ;;  %s278_s30 = scalar_lea.vmem (%p5371_p0), [#allocation2], %s3702_s20 }
  0x54   : > { %s5399_s22 = smov (!%p281_p4, %s280_s22), 13 }
  0x55   : > { %s4568_s16 = smul.u32 768, %s5399_s22 }
  0x57   : > { %s286_s18 = ssub.s32 9984, %s4568_s16 }
  0x58   : > { %287 = vsyncadd %s4571_s23, %s286_s18  ;;  %p3254_p11 = scmp.ne.s32.totalorder %s4568_s16, 0  ;;  %s3740_s10 = smul.u32 9984, %s4372_s27 }
  0x59   : > { %s293_s8 = sshll.u32 %s278_s30, 4  ;;  %s4276_s27 = scalar_lea.hbm %s5351_s0, 19200  ;;  %s4581_s8 = int_to_ptr.vmem [resolvable:$true] %s293_s8 }
  0x5a   : > { %s4579_s14 = scalar_lea.hbm %s5351_s0, %s3740_s10 }
  0x5b   : > { %s4272_s15 = scalar_lea.hbm %s4579_s14, %s4568_s16  ;;  %p4277_p12 = scmp.lt.s32.totalorder %s4579_s14, %s5351_s0 }
  0x5c   : > { %p4273_p13 = scmp.ne.s32.totalorder %s4579_s14, %s4272_s15  ;;  %p4278_p1 = scmp.lt.s32.totalorder %s4276_s27, %s4272_s15 }
  0x5e   : > { %p4274_p7 = pnand %p4273_p13, %p3254_p11  ;;  %p4279_p2 = por %p4278_p1, %p4277_p12 }
  0x60   : > { %p4275_p9 = pneg %p4274_p7 }
  0x62   : > { %p4280_p6 = pnand %p4279_p2, %p4275_p9 }
  0x64   : > { %4283 = shalt.err (!%p4280_p6)
}
  0x65   : > { %s4284_s18 = scalar_lea.vmem %s4581_s8, %s4568_s16  ;;  %s4414_s30 = smov [#allocation2]  }
  0x66   : > { %p4285_p3 = scmp.ne.s32.totalorder %s4581_s8, %s4284_s18  ;;  %s4288_s10 = sshll.u32 %s4414_s30, 4  ;;  %s4289_s10 = int_to_ptr.vmem [resolvable:$false] %s4288_s10 }
  0x67   : > { %s4290_s21 = scalar_lea.vmem %s4289_s10, 19968  ;;  %p4291_p10 = scmp.lt.s32.totalorder %s4581_s8, %s4289_s10 }
  0x68   : > { %p4286_p5 = pnand %p4285_p3, %p3254_p11  ;;  %p4292_p0 = scmp.lt.s32.totalorder %s4290_s21, %s4284_s18 }
  0x6a   : > { %p4287_p8 = pneg %p4286_p5  ;;  %p4293_p4 = por %p4292_p0, %p4291_p10 }
  0x6c   : > { %p4294_p13 = pnand %p4293_p4, %p4287_p8 }
  0x6e   : > { %4297 = shalt.err (!%p4294_p13)
}
  0x6f   : > { %s4415_s24 = smov 768   ;;  %s4416_s15 = smov 48  }
  0x70   : > { %299 = dma.hbm_to_vmem [thread:$0]  (%p3254_p11), %s4579_s14, %s4568_s16, %s4581_s8, %s4571_s23, %s4415_s24, %s4415_s24, %s4416_s15  }
  0x71 PF: > { %p5372_p7 = scmp.ne.s32.totalorder %s5369_s13, 0 }
  0x73   : > { %305 = sbr.rel (%p5372_p7) target bundleno = 1031 (0x407), region = 48 }
  0x78   : > { %s4610_s17 = sand.u32 1, %s4364_s25   ;;  %p5373_p9 = scmp.ne.s32.totalorder %s5367_s11, 0 }
  0x79   : > { %s3704_s19 = smul.u32 624, %s4610_s17  ;;  %s308_s27 = scalar_lea.sflag [#allocation3], %s4610_s17 }
  0x7b   : > { %s4614_s20 = scalar_lea.vmem [#allocation2], %s3704_s19 }
  0x7c   : > { %4347 = dma.done.wait (%p5373_p9), %s308_s27, 9984  }
  0x7d   : > { %4349 = vsyncadd (%p5373_p9), %s308_s27, 4294957312  ;;  %p5374_p11 = scmp.eq.s32.totalorder %s4478_s28, 0 }
  0x7f   : > { %4351 = dma.done.wait (%p5374_p11), [#allocation5], 23104   ;;  %p5375_p12 = pmov %p5374_p11 }
  0x80   : > { %p5376_p1 = pmov %p5374_p11 }
  0x81   : > { %4353 = vsyncadd (%p5375_p12), [#allocation5], 4294944192 }
  0x82   : > { %4355 = dma.done.wait (%p5376_p1), [#allocation8], 5120   ;;  %p5377_p2 = pmov %p5376_p1 }
  0x83   : > { %v3854_v0 = vld [vmem:[#allocation4 + $0xe4] ss:$16 sps:$4 sm:$0xff]   ;;  %v3858_v2 = vld [vmem:[#allocation4 + $0xe0] ss:$16 sps:$4 sm:$0xff]   ;;  %v370_v46 = vld [vmem:[%s4614_s20 + $0x8] sm:$0xff]  ;;  %vm1591_vm0 = vcmask 654336  }
  0x84   : > { %4357 = vsyncadd (%p5377_p2), [#allocation8], 4294962176  ;;  %v3856_v1 = vld [vmem:[#allocation4 + $0x2e4] ss:$16 sps:$4 sm:$0xff]   ;;  %1613 = vmatprep.subr.bf16.mxu0 %v3854_v0  ;;  %v3859_v3 = vld [vmem:[#allocation4 + $0x2e0] ss:$16 sps:$4 sm:$0xff]  }
  0x85   : > { %1714 = vmatprep.subr.bf16.mxu1 %v3856_v1  ;;  %v3860_v4 = vld [vmem:[#allocation4 + $0xc4] ss:$16 sps:$4 sm:$0xff]   ;;  %1614 = vmatpush1.bf16.msra.mxu0 %v3858_v2  ;;  %v3864_v6 = vld [vmem:[#allocation4 + $0xc0] ss:$16 sps:$4 sm:$0xff]   ;;  %v376_v47 = vld [vmem:[%s4614_s20 + $0x38] sm:$0xff]  ;;  %vm4418_vm1 = vmmov 0  }
  0x86   : > { %1715 = vmatpush1.bf16.msra.mxu1 %v3859_v3  ;;  %v3862_v5 = vld [vmem:[#allocation4 + $0x2c4] ss:$16 sps:$4 sm:$0xff]   ;;  %1615 = vmatprep.subr.bf16.mxu0 %v3860_v4  ;;  %v3865_v7 = vld [vmem:[#allocation4 + $0x2c0] ss:$16 sps:$4 sm:$0xff]   ;;  %v372_v48 = vld [vmem:[%s4614_s20 + $0x18] sm:$0xff]  ;;  %v4632_v53 = vpack.c.bf16 %v376_v47, %v370_v46  ;;  %s3705_s16 = smul.u32 104, %s4610_s17 }
  0x87   : > { %1716 = vmatprep.subr.bf16.mxu1 %v3862_v5  ;;  %v3866_v8 = vld [vmem:[#allocation4 + $0xa4] ss:$16 sps:$4 sm:$0xff]   ;;  %v3870_v10 = vld [vmem:[#allocation4 + $0xa0] ss:$16 sps:$4 sm:$0xff]   ;;  %v378_v49 = vld [vmem:[%s4614_s20 + $0x48] sm:$0xff]  ;;  %p5390_p6 = scmp.ne.s32.totalorder %s5368_s12, 0 }
  0x88   : > { %v3868_v9 = vld [vmem:[#allocation4 + $0x2a4] ss:$16 sps:$4 sm:$0xff]   ;;  %v3871_v11 = vld [vmem:[#allocation4 + $0x2a0] ss:$16 sps:$4 sm:$0xff]   ;;  %v4634_v54 = vpack.c.bf16 %v378_v49, %v372_v48  ;;  %1645 = vmatprep.mubr.bf16.mxu0 %v4632_v53  ;;  %s5244_s14 = scalar_lea.vmem [#allocation10], %s3705_s16   ;;  %s2937_s22 = smul.u32 (%p5390_p6), 13, %s4478_s28 }
  0x89   : > { %1616 = vmatpush1.bf16.msra.mxu0 %v3864_v6  ;;  %v3872_v12 = vld [vmem:[#allocation4 + $0x84] ss:$16 sps:$4 sm:$0xff]   ;;  %v3876_v14 = vld [vmem:[#allocation4 + $0x80] ss:$16 sps:$4 sm:$0xff]   ;;  %s3510_s18 = smul.u32 (%p5390_p6), 104, %s4478_s28 }
  0x8a   : > { %1717 = vmatpush1.bf16.msra.mxu1 %v3865_v7  ;;  %1617 = vmatprep.subr.bf16.mxu0 %v3866_v8  ;;  %v3874_v13 = vld [vmem:[#allocation4 + $0x284] ss:$16 sps:$4 sm:$0xff]   ;;  %v3877_v15 = vld [vmem:[#allocation4 + $0x280] ss:$16 sps:$4 sm:$0xff]   ;;  %s2938_s30 = ssub.s32 (%p5390_p6), 25, %s2937_s22 }
  0x8b   : > { %1718 = vmatprep.subr.bf16.mxu1 %v3868_v9  ;;  %v3878_v16 = vld [vmem:[#allocation4 + $0x64] ss:$16 sps:$4 sm:$0xff]   ;;  %v3882_v18 = vld [vmem:[#allocation4 + $0x60] ss:$16 sps:$4 sm:$0xff]   ;;  %1746 = vmatprep.mubr.bf16.mxu1 %v4634_v54  ;;  %p2939_p3 = scmp.lt.s32.totalorder (%p5390_p6), %s2938_s30, 13  ;;  %s5266_s24 = scalar_lea.vmem (%p5390_p6), %s5358_s7, %s3510_s18  }
  0x8c   : > { %v3880_v17 = vld [vmem:[#allocation4 + $0x264] ss:$16 sps:$4 sm:$0xff]   ;;  %v3883_v19 = vld [vmem:[#allocation4 + $0x260] ss:$16 sps:$4 sm:$0xff]  }
  0x8d   : > { %1618 = vmatpush1.bf16.msra.mxu0 %v3870_v10  ;;  %v3884_v20 = vld [vmem:[#allocation4 + $0x44] ss:$16 sps:$4 sm:$0xff]   ;;  %v3888_v22 = vld [vmem:[#allocation4 + $0x40] ss:$16 sps:$4 sm:$0xff]  }
  0x8e   : > { %1719 = vmatpush1.bf16.msra.mxu1 %v3871_v11  ;;  %1619 = vmatprep.subr.bf16.mxu0 %v3872_v12  ;;  %v3886_v21 = vld [vmem:[#allocation4 + $0x244] ss:$16 sps:$4 sm:$0xff]   ;;  %v3889_v23 = vld [vmem:[#allocation4 + $0x240] ss:$16 sps:$4 sm:$0xff]   ;;  %v3955_v11 = vld [vmem:[#allocation4 + $0xec] ss:$16 sps:$4 sm:$0xff]  }
  0x8f   : > { %1720 = vmatprep.subr.bf16.mxu1 %v3874_v13  ;;  %v3890_v24 = vld [vmem:[#allocation4 + $0x24] ss:$16 sps:$4 sm:$0xff]   ;;  %v3894_v26 = vld [vmem:[#allocation4 + $0x20] ss:$16 sps:$4 sm:$0xff]   ;;  %v3953_v13 = vld [vmem:[#allocation4 + $0xe8] ss:$16 sps:$4 sm:$0xff]  }
  0x90   : > { %v3892_v25 = vld [vmem:[#allocation4 + $0x224] ss:$16 sps:$4 sm:$0xff]   ;;  %v3895_v27 = vld [vmem:[#allocation4 + $0x220] ss:$16 sps:$4 sm:$0xff]  }
  0x91   : > { %1620 = vmatpush1.bf16.msra.mxu0 %v3876_v14  ;;  %v3896_v28 = vld [vmem:[#allocation4 + $0x4] ss:$16 sps:$4 sm:$0xff]   ;;  %v3900_v30 = vld [vmem:[#allocation4] ss:$16 sps:$4 sm:$0xff]   ;;  %v382_v14 = vld [vmem:[%s4614_s20 + $0x68] sm:$0xff] }
  0x92   : > { %1721 = vmatpush1.bf16.msra.mxu1 %v3877_v15  ;;  %1621 = vmatprep.subr.bf16.mxu0 %v3878_v16  ;;  %v3898_v29 = vld [vmem:[#allocation4 + $0x204] ss:$16 sps:$4 sm:$0xff]   ;;  %v3901_v31 = vld [vmem:[#allocation4 + $0x200] ss:$16 sps:$4 sm:$0xff]   ;;  %v388_v15 = vld [vmem:[%s4614_s20 + $0x98] sm:$0xff] }
  0x93   : > { %1722 = vmatprep.subr.bf16.mxu1 %v3880_v17  ;;  %v3902_v32 = vld [vmem:[#allocation4 + $0x1e4] ss:$16 sps:$4 sm:$0xff]   ;;  %v3906_v34 = vld [vmem:[#allocation4 + $0x1e0] ss:$16 sps:$4 sm:$0xff]  }
  0x94   : > { %v3904_v33 = vld [vmem:[#allocation4 + $0x3e4] ss:$16 sps:$4 sm:$0xff]   ;;  %v3907_v35 = vld [vmem:[#allocation4 + $0x3e0] ss:$16 sps:$4 sm:$0xff]  }
  0x95   : > { %1622 = vmatpush1.bf16.msra.mxu0 %v3882_v18  ;;  %v3908_v36 = vld [vmem:[#allocation4 + $0x1c4] ss:$16 sps:$4 sm:$0xff]   ;;  %v3912_v38 = vld [vmem:[#allocation4 + $0x1c0] ss:$16 sps:$4 sm:$0xff]   ;;  %v384_v18 = vld [vmem:[%s4614_s20 + $0x78] sm:$0xff] }
  0x96   : > { %1723 = vmatpush1.bf16.msra.mxu1 %v3883_v19  ;;  %1623 = vmatprep.subr.bf16.mxu0 %v3884_v20  ;;  %v3910_v37 = vld [vmem:[#allocation4 + $0x3c4] ss:$16 sps:$4 sm:$0xff]   ;;  %v3913_v39 = vld [vmem:[#allocation4 + $0x3c0] ss:$16 sps:$4 sm:$0xff]   ;;  %v390_v19 = vld [vmem:[%s4614_s20 + $0xa8] sm:$0xff] }
  0x97   : > { %1724 = vmatprep.subr.bf16.mxu1 %v3886_v21  ;;  %v3914_v40 = vld [vmem:[#allocation4 + $0x1a4] ss:$16 sps:$4 sm:$0xff]   ;;  %v3918_v42 = vld [vmem:[#allocation4 + $0x1a0] ss:$16 sps:$4 sm:$0xff]   ;;  %v3958_v20 = vld [vmem:[#allocation4 + $0xcc] ss:$16 sps:$4 sm:$0xff]  }
  0x98   : > { %v3916_v41 = vld [vmem:[#allocation4 + $0x3a4] ss:$16 sps:$4 sm:$0xff]   ;;  %v3919_v43 = vld [vmem:[#allocation4 + $0x3a0] ss:$16 sps:$4 sm:$0xff]  }
  0x99   : > { %1624 = vmatpush1.bf16.msra.mxu0 %v3888_v22  ;;  %v3920_v44 = vld [vmem:[#allocation4 + $0x184] ss:$16 sps:$4 sm:$0xff]   ;;  %v3924_v50 = vld [vmem:[#allocation4 + $0x180] ss:$16 sps:$4 sm:$0xff]   ;;  %v3956_v22 = vld [vmem:[#allocation4 + $0xc8] ss:$16 sps:$4 sm:$0xff]  }
  0x9a   : > { %1725 = vmatpush1.bf16.msra.mxu1 %v3889_v23  ;;  %1625 = vmatprep.subr.bf16.mxu0 %v3890_v24  ;;  %v3922_v45 = vld [vmem:[#allocation4 + $0x384] ss:$16 sps:$4 sm:$0xff]   ;;  %v3925_v51 = vld [vmem:[#allocation4 + $0x380] ss:$16 sps:$4 sm:$0xff]   ;;  %v4650_v24 = vpack.c.bf16 %v388_v15, %v382_v14  ;;  %v420_v15 = vld [vmem:[%s4614_s20 + $0x198] sm:$0xff] }
  0x9b   : > { %1726 = vmatprep.subr.bf16.mxu1 %v3892_v25  ;;  %v3926_v52 = vld [vmem:[#allocation4 + $0x164] ss:$16 sps:$4 sm:$0xff]   ;;  %v3930_v56 = vld [vmem:[#allocation4 + $0x160] ss:$16 sps:$4 sm:$0xff]   ;;  %v4652_v25 = vpack.c.bf16 %v390_v19, %v384_v18  ;;  %v426_v18 = vld [vmem:[%s4614_s20 + $0x1c8] sm:$0xff] }
  0x9c   : > { %v3928_v55 = vld [vmem:[#allocation4 + $0x364] ss:$16 sps:$4 sm:$0xff]   ;;  %v3931_v57 = vld [vmem:[#allocation4 + $0x360] ss:$16 sps:$4 sm:$0xff]  }
  0x9d   : > { %1626 = vmatpush1.bf16.msra.mxu0 %v3894_v26  ;;  %v3932_v58 = vld [vmem:[#allocation4 + $0x144] ss:$16 sps:$4 sm:$0xff]   ;;  %v3936_v60 = vld [vmem:[#allocation4 + $0x140] ss:$16 sps:$4 sm:$0xff]  }
  0x9e   : > { %1727 = vmatpush1.bf16.msra.mxu1 %v3895_v27  ;;  %1627 = vmatprep.subr.bf16.mxu0 %v3896_v28  ;;  %v3934_v59 = vld [vmem:[#allocation4 + $0x344] ss:$16 sps:$4 sm:$0xff]   ;;  %v3937_v61 = vld [vmem:[#allocation4 + $0x340] ss:$16 sps:$4 sm:$0xff]  }
  0x9f   : > { %1728 = vmatprep.subr.bf16.mxu1 %v3898_v29  ;;  %v3938_v62 = vld [vmem:[#allocation4 + $0x124] ss:$16 sps:$4 sm:$0xff]   ;;  %v3942_v0 = vld [vmem:[#allocation4 + $0x120] ss:$16 sps:$4 sm:$0xff]  }
  0xa0   : > { %v3940_v63 = vld [vmem:[#allocation4 + $0x324] ss:$16 sps:$4 sm:$0xff]   ;;  %v3943_v1 = vld [vmem:[#allocation4 + $0x320] ss:$16 sps:$4 sm:$0xff]  }
  0xa1   : > { %1628 = vmatpush1.bf16.msra.mxu0 %v3900_v30  ;;  %v3944_v2 = vld [vmem:[#allocation4 + $0x104] ss:$16 sps:$4 sm:$0xff]   ;;  %v3948_v4 = vld [vmem:[#allocation4 + $0x100] ss:$16 sps:$4 sm:$0xff]   ;;  %v3964_v30 = vld [vmem:[#allocation4 + $0xac] ss:$16 sps:$4 sm:$0xff]  }
  0xa2   : > { %1729 = vmatpush1.bf16.msra.mxu1 %v3901_v31  ;;  %1629 = vmatprep.subr.bf16.mxu0 %v3902_v32  ;;  %v3946_v3 = vld [vmem:[#allocation4 + $0x304] ss:$16 sps:$4 sm:$0xff]   ;;  %v3949_v5 = vld [vmem:[#allocation4 + $0x300] ss:$16 sps:$4 sm:$0xff]   ;;  %v3962_v32 = vld [vmem:[#allocation4 + $0xa8] ss:$16 sps:$4 sm:$0xff]  }
  0xa3   : > { %1730 = vmatprep.subr.bf16.mxu1 %v3904_v33  ;;  %v369_v6 = vld [vmem:[%s4614_s20] sm:$0xff]  ;;  %v375_v7 = vld [vmem:[%s4614_s20 + $0x30] sm:$0xff]  ;;  %v394_v33 = vld [vmem:[%s4614_s20 + $0xc8] sm:$0xff] }
  0xa4   : > { %v371_v8 = vld [vmem:[%s4614_s20 + $0x10] sm:$0xff]  ;;  %v377_v9 = vld [vmem:[%s4614_s20 + $0x40] sm:$0xff]  ;;  %v4644_v16 = vpack.c.bf16 %v375_v7, %v369_v6 }
  0xa5   : > { %1630 = vmatpush2.bf16.msra.mxu0 %v3906_v34  ;;  %v3952_v10 = vld [vmem:[#allocation4 + $0x4e4] ss:$16 sps:$4 sm:$0xff]   ;;  %v3950_v12 = vld [vmem:[#allocation4 + $0x4e0] ss:$16 sps:$4 sm:$0xff]   ;;  %v4646_v17 = vpack.c.bf16 %v377_v9, %v371_v8  ;;  %v400_v34 = vld [vmem:[%s4614_s20 + $0xf8] sm:$0xff] }
  0xa6   : > { %1731 = vmatpush2.bf16.msra.mxu1 %v3907_v35  ;;  %1631 = vmatprep.subr.bf16.mxu0 %v3908_v36  ;;  %v3961_v21 = vld [vmem:[#allocation4 + $0x4c4] ss:$16 sps:$4 sm:$0xff]   ;;  %v3959_v23 = vld [vmem:[#allocation4 + $0x4c0] ss:$16 sps:$4 sm:$0xff]   ;;  %v3988_v8 = vld [vmem:[#allocation4 + $0x2c] ss:$16 sps:$4 sm:$0xff]  }
  0xa7   : > { %1732 = vmatprep.subr.bf16.mxu1 %v3910_v37  ;;  %v381_v26 = vld [vmem:[%s4614_s20 + $0x60] sm:$0xff]  ;;  %v387_v27 = vld [vmem:[%s4614_s20 + $0x90] sm:$0xff]  ;;  %v396_v37 = vld [vmem:[%s4614_s20 + $0xd8] sm:$0xff] }
  0xa8   : > { %v383_v28 = vld [vmem:[%s4614_s20 + $0x70] sm:$0xff]  ;;  %v389_v29 = vld [vmem:[%s4614_s20 + $0xa0] sm:$0xff]  ;;  %v4664_v35 = vpack.c.bf16 %v387_v27, %v381_v26 }
  0xa9   : > { %1632 = vmatpush2.bf16.msra.mxu0 %v3912_v38  ;;  %v3967_v31 = vld [vmem:[#allocation4 + $0x4a4] ss:$16 sps:$4 sm:$0xff]   ;;  %v4666_v36 = vpack.c.bf16 %v389_v29, %v383_v28  ;;  %v402_v38 = vld [vmem:[%s4614_s20 + $0x108] sm:$0xff]  ;;  %v3989_v19 = vld [vmem:[#allocation4 + $0x420] ss:$16 sps:$4 sm:$0xff]   ;;  %v4713_v28 = vpack.c.bf16 %v426_v18, %v420_v15 }
  0xaa   : > { %1733 = vmatpush2.bf16.msra.mxu1 %v3913_v39  ;;  %1633 = vmatprep.subr.bf16.mxu0 %v3914_v40  ;;  %v3965_v39 = vld [vmem:[#allocation4 + $0x4a0] ss:$16 sps:$4 sm:$0xff]   ;;  %v3970_v40 = vld [vmem:[#allocation4 + $0x8c] ss:$16 sps:$4 sm:$0xff]   ;;  %v3991_v9 = vld [vmem:[#allocation4 + $0x424] ss:$16 sps:$4 sm:$0xff]  }
  0xab   : > { %1734 = vmatprep.subr.bf16.mxu1 %v3916_v41  ;;  %v3973_v41 = vld [vmem:[#allocation4 + $0x484] ss:$16 sps:$4 sm:$0xff]   ;;  %v4024_v18 = vld [vmem:[#allocation4 + $0x16c] ss:$16 sps:$4 sm:$0xff]  }
  0xac   : > { %v393_v46 = vld [vmem:[%s4614_s20 + $0xc0] sm:$0xff]  ;;  %v399_v47 = vld [vmem:[%s4614_s20 + $0xf0] sm:$0xff] }
  0xad   : > { %1634 = vmatpush2.bf16.msra.mxu0 %v3918_v42  ;;  %v3968_v42 = vld [vmem:[#allocation4 + $0x88] ss:$16 sps:$4 sm:$0xff]   ;;  %v395_v48 = vld [vmem:[%s4614_s20 + $0xd0] sm:$0xff]  ;;  %v401_v49 = vld [vmem:[%s4614_s20 + $0x100] sm:$0xff] }
  0xae   : > { %1735 = vmatpush2.bf16.msra.mxu1 %v3919_v43  ;;  %1635 = vmatprep.subr.bf16.mxu0 %v3920_v44  ;;  %v3971_v43 = vld [vmem:[#allocation4 + $0x480] ss:$16 sps:$4 sm:$0xff]   ;;  %v4670_v44 = vpack.c.bf16 %v400_v34, %v394_v33  ;;  %v3997_v26 = vld [vmem:[#allocation4 + $0x404] ss:$16 sps:$4 sm:$0xff]   ;;  %v430_v34 = vld [vmem:[%s4614_s20 + $0x1e8] sm:$0xff] }
  0xaf   : > { %1736 = vmatprep.subr.bf16.mxu1 %v3922_v45  ;;  %v4672_v45 = vpack.c.bf16 %v402_v38, %v396_v37  ;;  %v407_v6 = vld [vmem:[%s4614_s20 + $0x130] sm:$0xff]  ;;  %v413_v7 = vld [vmem:[%s4614_s20 + $0x160] sm:$0xff]  ;;  %v436_v37 = vld [vmem:[%s4614_s20 + $0x218] sm:$0xff] }
  0xb0   : > { %v4706_v14 = vpack.c.bf16 %v413_v7, %v407_v6  ;;  %v417_v27 = vld [vmem:[%s4614_s20 + $0x180] sm:$0xff]  ;;  %v423_v29 = vld [vmem:[%s4614_s20 + $0x1b0] sm:$0xff]  ;;  %v4018_v6 = vld [vmem:[#allocation4 + $0x18c] ss:$16 sps:$4 sm:$0xff]  }
  0xb1   : > { %1636 = vmatpush2.bf16.msra.mxu0 %v3924_v50  ;;  %v3976_v50 = vld [vmem:[#allocation4 + $0x6c] ss:$16 sps:$4 sm:$0xff]   ;;  %v4003_v33 = vld [vmem:[#allocation4 + $0x584] ss:$16 sps:$4 sm:$0xff]   ;;  %v4724_v38 = vpack.c.bf16 %v423_v29, %v417_v27  ;;  %v4025_v29 = vld [vmem:[#allocation4 + $0x500] ss:$16 sps:$4 sm:$0xff]  }
  0xb2   : > { %1737 = vmatpush2.bf16.msra.mxu1 %v3925_v51  ;;  %1637 = vmatprep.subr.bf16.mxu0 %v3926_v52  ;;  %v3979_v51 = vld [vmem:[#allocation4 + $0x464] ss:$16 sps:$4 sm:$0xff]   ;;  %v3974_v52 = vld [vmem:[#allocation4 + $0x68] ss:$16 sps:$4 sm:$0xff]  }
  0xb3   : > { %1738 = vmatprep.subr.bf16.mxu1 %v3928_v55  ;;  %v406_v55 = vld [vmem:[%s4614_s20 + $0x128] sm:$0xff]  ;;  %v443_v15 = vld [vmem:[%s4614_s20 + $0x250] sm:$0xff] }
  0xb4   : > { %v4762_v27 = vpack.c.bf16 %v443_v15, %v443_v15 }
  0xb5   : > { %1638 = vmatpush2.bf16.msra.mxu0 %v3930_v56  ;;  %v412_v56 = vld [vmem:[%s4614_s20 + $0x158] sm:$0xff] }
  0xb6   : > { %1739 = vmatpush2.bf16.msra.mxu1 %v3931_v57  ;;  %1639 = vmatprep.subr.bf16.mxu0 %v3932_v58  ;;  %v4684_v57 = vpack.c.bf16 %v399_v47, %v393_v46  ;;  %v4686_v58 = vpack.c.bf16 %v401_v49, %v395_v48  ;;  %v4006_v46 = vld [vmem:[#allocation4 + $0x1cc] ss:$16 sps:$4 sm:$0xff]   ;;  %v4730_v47 = vpack.c.bf16 %v436_v37, %v430_v34  ;;  %v4009_v48 = vld [vmem:[#allocation4 + $0x564] ss:$16 sps:$4 sm:$0xff]   ;;  %v4004_v49 = vld [vmem:[#allocation4 + $0x1c8] ss:$16 sps:$4 sm:$0xff]  }
  0xb7   : > { %1740 = vmatprep.subr.bf16.mxu1 %v3934_v59  ;;  %v408_v59 = vld [vmem:[%s4614_s20 + $0x138] sm:$0xff]  ;;  %v373_v34 = vld [vmem:[%s4614_s20 + $0x20] sm:$0xff]  ;;  %v379_v37 = vld [vmem:[%s4614_s20 + $0x50] sm:$0xff] }
  0xb9   : > { %1640 = vmatpush2.bf16.msra.mxu0 %v3936_v60  ;;  %v414_v60 = vld [vmem:[%s4614_s20 + $0x168] sm:$0xff] }
  0xba   : > { %1741 = vmatpush2.bf16.msra.mxu1 %v3937_v61  ;;  %1641 = vmatprep.subr.bf16.mxu0 %v3938_v62  ;;  %v3977_v61 = vld [vmem:[#allocation4 + $0x460] ss:$16 sps:$4 sm:$0xff]   ;;  %v3982_v62 = vld [vmem:[#allocation4 + $0x4c] ss:$16 sps:$4 sm:$0xff]  }
  0xbb   : > { %1742 = vmatprep.subr.bf16.mxu1 %v3940_v63  ;;  %v3985_v63 = vld [vmem:[#allocation4 + $0x444] ss:$16 sps:$4 sm:$0xff]  }
  0xbd   : > { %1642 = vmatpush2.bf16.msra.mxu0 %v3942_v0  ;;  %v3980_v0 = vld [vmem:[#allocation4 + $0x48] ss:$16 sps:$4 sm:$0xff]  }
  0xbe   : > { %1743 = vmatpush2.bf16.msra.mxu1 %v3943_v1  ;;  %1643 = vmatprep.subr.bf16.mxu0 %v3944_v2  ;;  %v3983_v1 = vld [vmem:[#allocation4 + $0x440] ss:$16 sps:$4 sm:$0xff]   ;;  %v4690_v2 = vpack.c.bf16 %v412_v56, %v406_v55  ;;  %v4012_v56 = vld [vmem:[#allocation4 + $0x1ac] ss:$16 sps:$4 sm:$0xff]  }
  0xbf   : > { %1744 = vmatprep.subr.bf16.mxu1 %v3946_v3  ;;  %v4692_v3 = vpack.c.bf16 %v414_v60, %v408_v59  ;;  %v431_v59 = vld [vmem:[%s4614_s20 + $0x1f0] sm:$0xff]  ;;  %v437_v60 = vld [vmem:[%s4614_s20 + $0x220] sm:$0xff] }
  0xc1   : > { %1644 = vmatpush2.bf16.msra.mxu0 %v3948_v4  ;;  %v405_v4 = vld [vmem:[%s4614_s20 + $0x120] sm:$0xff] }
  0xc2   : > { %1745 = vmatpush2.bf16.msra.mxu1 %v3949_v5  ;;  %1815 = vmatprep.subr.bf16.mxu0 %v3952_v10  ;;  %v411_v5 = vld [vmem:[%s4614_s20 + $0x150] sm:$0xff]  ;;  %v3986_v10 = vld [vmem:[#allocation4 + $0x28] ss:$16 sps:$4 sm:$0xff]  }
  0xc3   : > { %1916 = vmatprep.subr.bf16.mxu1 %v3955_v11  ;;  %v418_v11 = vld [vmem:[%s4614_s20 + $0x188] sm:$0xff] }
  0xc4   : > { %1646 = vmatmul.mubr.bf16.vlgmr.msra.gmra.mxu0 %v4644_v16 }
  0xc5   : > { %1747 = vmatmul.mubr.bf16.vlgmr.msra.gmra.mxu1 %v4646_v17  ;;  %1816 = vmatpush1.bf16.msra.mxu0 %v3950_v12  ;;  %v424_v12 = vld [vmem:[%s4614_s20 + $0x1b8] sm:$0xff] }
  0xc6   : > { %1917 = vmatpush1.bf16.msra.mxu1 %v3953_v13  ;;  %1817 = vmatprep.subr.bf16.mxu0 %v3961_v21  ;;  %v4704_v13 = vpack.c.bf16 %v411_v5, %v405_v4  ;;  %v4710_v21 = vpack.c.bf16 %v424_v12, %v418_v11  ;;  %v4010_v4 = vld [vmem:[#allocation4 + $0x1a8] ss:$16 sps:$4 sm:$0xff]   ;;  %v4013_v5 = vld [vmem:[#allocation4 + $0x540] ss:$16 sps:$4 sm:$0xff]  }
  0xc7   : > { %1918 = vmatprep.subr.bf16.mxu1 %v3958_v20  ;;  %1655 = vmatprep.mubr.bf16.mxu0 %v4650_v24  ;;  %v3994_v20 = vld [vmem:[#allocation4 + $0xc] ss:$16 sps:$4 sm:$0xff]   ;;  %v4019_v11 = vld [vmem:[#allocation4 + $0x520] ss:$16 sps:$4 sm:$0xff]  }
  0xc8   : > { %1756 = vmatprep.mubr.bf16.mxu1 %v4652_v25  ;;  %v441_v12 = vld [vmem:[%s4614_s20 + $0x240] sm:$0xff] }
  0xc9   : > { %1818 = vmatpush1.bf16.msra.mxu0 %v3959_v23  ;;  %v3995_v23 = vld [vmem:[#allocation4 + $0x400] ss:$16 sps:$4 sm:$0xff]  }
  0xca   : > { %1919 = vmatpush1.bf16.msra.mxu1 %v3956_v22  ;;  %1819 = vmatprep.subr.bf16.mxu0 %v3967_v31  ;;  %v3992_v22 = vld [vmem:[#allocation4 + $0x8] ss:$16 sps:$4 sm:$0xff]   ;;  %v419_v31 = vld [vmem:[%s4614_s20 + $0x190] sm:$0xff] }
  0xcb   : > { %1920 = vmatprep.subr.bf16.mxu1 %v3964_v30  ;;  %v4000_v30 = vld [vmem:[#allocation4 + $0x1ec] ss:$16 sps:$4 sm:$0xff]  }
  0xcc   : > { %1656 = vmatmul.mubr.bf16.gmra.mxu0 %v4664_v35 }
  0xcd   : > { %1757 = vmatmul.mubr.bf16.gmra.mxu1 %v4666_v36  ;;  %1820 = vmatpush1.bf16.msra.mxu0 %v3965_v39 }
  0xce   : > { %1921 = vmatpush1.bf16.msra.mxu1 %v3962_v32  ;;  %1821 = vmatprep.subr.bf16.mxu0 %v3973_v41  ;;  %v425_v32 = vld [vmem:[%s4614_s20 + $0x1c0] sm:$0xff]  ;;  %v438_v41 = vld [vmem:[%s4614_s20 + $0x228] sm:$0xff] }
  0xcf   : > { %1922 = vmatprep.subr.bf16.mxu1 %v3970_v40  ;;  %1665 = vmatprep.mubr.bf16.mxu0 %v4670_v44  ;;  %v4726_v39 = vpack.c.bf16 %v425_v32, %v419_v31  ;;  %v432_v40 = vld [vmem:[%s4614_s20 + $0x1f8] sm:$0xff] }
  0xd0   : > { %1766 = vmatprep.mubr.bf16.mxu1 %v4672_v45  ;;  %v4734_v55 = vpack.c.bf16 %v438_v41, %v432_v40  ;;  %v4033_v32 = vld [vmem:[#allocation4 + $0x2ec] ss:$16 sps:$4 sm:$0xff]   ;;  %v4031_v41 = vld [vmem:[#allocation4 + $0x2e8] ss:$16 sps:$4 sm:$0xff]  }
  0xd1   : > { %1822 = vmatpush1.bf16.msra.mxu0 %v3971_v43  ;;  %v4001_v43 = vld [vmem:[#allocation4 + $0x580] ss:$16 sps:$4 sm:$0xff]   ;;  %v4036_v40 = vld [vmem:[#allocation4 + $0x12c] ss:$16 sps:$4 sm:$0xff]  }
  0xd2   : > { %1923 = vmatpush1.bf16.msra.mxu1 %v3968_v42  ;;  %1823 = vmatprep.subr.bf16.mxu0 %v3979_v51  ;;  %v3998_v42 = vld [vmem:[#allocation4 + $0x1e8] ss:$16 sps:$4 sm:$0xff]   ;;  %v429_v51 = vld [vmem:[%s4614_s20 + $0x1e0] sm:$0xff] }
  0xd3   : > { %1924 = vmatprep.subr.bf16.mxu1 %v3976_v50  ;;  %v4007_v50 = vld [vmem:[#allocation4 + $0x560] ss:$16 sps:$4 sm:$0xff]  }
  0xd4   : > { %1666 = vmatmul.mubr.bf16.gmra.mxu0 %v4684_v57 }
  0xd5   : > { %1767 = vmatmul.mubr.bf16.gmra.mxu1 %v4686_v58  ;;  %1824 = vmatpush1.bf16.msra.mxu0 %v3977_v61  ;;  %v4015_v61 = vld [vmem:[#allocation4 + $0x544] ss:$16 sps:$4 sm:$0xff]  }
  0xd6   : > { %1925 = vmatpush1.bf16.msra.mxu1 %v3974_v52  ;;  %1825 = vmatprep.subr.bf16.mxu0 %v3985_v63  ;;  %v435_v52 = vld [vmem:[%s4614_s20 + $0x210] sm:$0xff] }
  0xd7   : > { %1926 = vmatprep.subr.bf16.mxu1 %v3982_v62  ;;  %1675 = vmatprep.mubr.bf16.mxu0 %v4690_v2  ;;  %v442_v62 = vld [vmem:[%s4614_s20 + $0x248] sm:$0xff]  ;;  %v4743_v63 = vpack.c.bf16 %v435_v52, %v429_v51 }
  0xd8   : > { %1776 = vmatprep.mubr.bf16.mxu1 %v4692_v3  ;;  %v4748_v7 = vpack.c.bf16 %v442_v62, %v442_v62  ;;  %v4037_v51 = vld [vmem:[#allocation4 + $0x2c8] ss:$16 sps:$4 sm:$0xff]  }
  0xd9   : > { %1826 = vmatpush1.bf16.msra.mxu0 %v3983_v1  ;;  %v444_v1 = vld [vmem:[%s4614_s20 + $0x258] sm:$0xff] }
  0xda   : > { %1927 = vmatpush1.bf16.msra.mxu1 %v3980_v0  ;;  %1827 = vmatprep.subr.bf16.mxu0 %v3991_v9  ;;  %v4745_v0 = vpack.c.bf16 %v437_v60, %v431_v59  ;;  %v4021_v9 = vld [vmem:[#allocation4 + $0x524] ss:$16 sps:$4 sm:$0xff]  }
  0xdb   : > { %1928 = vmatprep.subr.bf16.mxu1 %v3988_v8  ;;  %v4016_v8 = vld [vmem:[#allocation4 + $0x188] ss:$16 sps:$4 sm:$0xff]   ;;  %v385_v59 = vld [vmem:[%s4614_s20 + $0x80] sm:$0xff]  ;;  %v391_v60 = vld [vmem:[%s4614_s20 + $0xb0] sm:$0xff] }
  0xdc   : > { %1676 = vmatmul.mubr.bf16.gmra.mxu0 %v4704_v13  ;;  %v4784_v62 = vpack.c.bf16 %v391_v60, %v385_v59  ;;  %v4081_v60 = vld [vmem:[#allocation4 + $0x44c] ss:$16 sps:$4 sm:$0xff]  }
  0xdd   : > { %1777 = vmatmul.mubr.bf16.gmra.mxu1 %v4706_v14  ;;  %1828 = vmatpush1.bf16.msra.mxu0 %v3989_v19  ;;  %v4027_v19 = vld [vmem:[#allocation4 + $0x504] ss:$16 sps:$4 sm:$0xff]  }
  0xde   : > { %1929 = vmatpush1.bf16.msra.mxu1 %v3986_v10  ;;  %1685 = vmatprep.mubr.bf16.mxu0 %v4710_v21  ;;  %v4750_v10 = vpack.c.bf16 %v444_v1, %v444_v1  ;;  %v398_v1 = vld [vmem:[%s4614_s20 + $0xe8] sm:$0xff] }
  0xdf   : > { %1930 = vmatprep.subr.bf16.mxu1 %v3994_v20  ;;  %1829 = vmatprep.subr.bf16.mxu0 %v3997_v26  ;;  %v374_v20 = vld [vmem:[%s4614_s20 + $0x28] sm:$0xff] }
  0xe0   : > { %1786 = vmatprep.mubr.bf16.mxu1 %v4713_v28  ;;  %v4022_v26 = vld [vmem:[#allocation4 + $0x168] ss:$16 sps:$4 sm:$0xff]  }
  0xe1   : > { %1830 = vmatpush1.bf16.msra.mxu0 %v3995_v23  ;;  %v4760_v23 = vpack.c.bf16 %v441_v12, %v441_v12  ;;  %v4052_v12 = vld [vmem:[#allocation4 + $0x4c8] ss:$16 sps:$4 sm:$0xff]  }
  0xe2   : > { %1931 = vmatpush1.bf16.msra.mxu1 %v3992_v22  ;;  %1837 = vmatprep.subr.bf16.mxu0 %v4003_v33  ;;  %v380_v22 = vld [vmem:[%s4614_s20 + $0x58] sm:$0xff] }
  0xe3   : > { %1932 = vmatprep.subr.bf16.mxu1 %v4000_v30  ;;  %v4030_v30 = vld [vmem:[#allocation4 + $0x14c] ss:$16 sps:$4 sm:$0xff]   ;;  %v4764_v31 = vpack.c.bf16 %v380_v22, %v374_v20  ;;  %v4028_v33 = vld [vmem:[#allocation4 + $0x148] ss:$16 sps:$4 sm:$0xff]   ;;  %v403_v20 = vld [vmem:[%s4614_s20 + $0x110] sm:$0xff] }
  0xe4   : > { %1686 = vmatmul.mubr.bf16.gmra.mxu0 %v4724_v38  ;;  %v4060_v22 = vld [vmem:[#allocation4 + $0x4ac] ss:$16 sps:$4 sm:$0xff]  }
  0xe5   : > { %1787 = vmatmul.mubr.bf16.gmra.mxu1 %v4726_v39  ;;  %1838 = vmatpush2.bf16.msra.mxu0 %v4001_v43  ;;  %v386_v43 = vld [vmem:[%s4614_s20 + $0x88] sm:$0xff] }
  0xe6   : > { %1933 = vmatpush2.bf16.msra.mxu1 %v3998_v42  ;;  %1695 = vmatprep.mubr.bf16.mxu0 %v4730_v47  ;;  %v4773_v42 = vpack.c.bf16 %v379_v37, %v373_v34  ;;  %v4066_v34 = vld [vmem:[#allocation4 + $0x48c] ss:$16 sps:$4 sm:$0xff]   ;;  %v4061_v37 = vld [vmem:[#allocation4 + $0x248] ss:$16 sps:$4 sm:$0xff]  }
  0xe7   : > { %1934 = vmatprep.subr.bf16.mxu1 %v4006_v46  ;;  %1839 = vmatprep.subr.bf16.mxu0 %v4009_v48  ;;  %v392_v46 = vld [vmem:[%s4614_s20 + $0xb8] sm:$0xff] }
  0xe8   : > { %1796 = vmatprep.mubr.bf16.mxu1 %v4734_v55  ;;  %v4034_v48 = vld [vmem:[#allocation4 + $0x128] ss:$16 sps:$4 sm:$0xff]   ;;  %v4777_v52 = vpack.c.bf16 %v392_v46, %v386_v43  ;;  %v409_v43 = vld [vmem:[%s4614_s20 + $0x140] sm:$0xff]  ;;  %v415_v46 = vld [vmem:[%s4614_s20 + $0x170] sm:$0xff] }
  0xe9   : > { %1840 = vmatpush2.bf16.msra.mxu0 %v4007_v50  ;;  %v4042_v50 = vld [vmem:[#allocation4 + $0x10c] ss:$16 sps:$4 sm:$0xff]  }
  0xea   : > { %1935 = vmatpush2.bf16.msra.mxu1 %v4004_v49  ;;  %1841 = vmatprep.subr.bf16.mxu0 %v4015_v61  ;;  %v4039_v49 = vld [vmem:[#allocation4 + $0x2cc] ss:$16 sps:$4 sm:$0xff]  }
  0xeb   : > { %1936 = vmatprep.subr.bf16.mxu1 %v4012_v56  ;;  %v4040_v56 = vld [vmem:[#allocation4 + $0x108] ss:$16 sps:$4 sm:$0xff]   ;;  %v4048_v61 = vld [vmem:[#allocation4 + $0x4ec] ss:$16 sps:$4 sm:$0xff]  }
  0xec   : > { %1696 = vmatmul.mubr.bf16.gmra.mxu0 %v4743_v63 }
  0xed   : > { %1797 = vmatmul.mubr.bf16.gmra.mxu1 %v4745_v0  ;;  %1842 = vmatpush2.bf16.msra.mxu0 %v4013_v5  ;;  %v4043_v5 = vld [vmem:[#allocation4 + $0x2a8] ss:$16 sps:$4 sm:$0xff]  }
  0xee   : > { %1937 = vmatpush2.bf16.msra.mxu1 %v4010_v4  ;;  %1705 = vmatprep.mubr.bf16.mxu0 %v4748_v7  ;;  %v404_v4 = vld [vmem:[%s4614_s20 + $0x118] sm:$0xff] }
  0xef   : > { %1938 = vmatprep.subr.bf16.mxu1 %v4018_v6  ;;  %1843 = vmatprep.subr.bf16.mxu0 %v4021_v9  ;;  %v4046_v6 = vld [vmem:[#allocation4 + $0x4e8] ss:$16 sps:$4 sm:$0xff]   ;;  %v4054_v9 = vld [vmem:[#allocation4 + $0x4cc] ss:$16 sps:$4 sm:$0xff]   ;;  %v4788_v15 = vpack.c.bf16 %v404_v4, %v398_v1  ;;  %v421_v4 = vld [vmem:[%s4614_s20 + $0x1a0] sm:$0xff] }
  0xf0   : > { %1806 = vmatprep.mubr.bf16.mxu1 %v4750_v10  ;;  %v4079_v1 = vld [vmem:[#allocation4 + $0x448] ss:$16 sps:$4 sm:$0xff]  }
  0xf1   : > { %1844 = vmatpush2.bf16.msra.mxu0 %v4019_v11  ;;  %v4049_v11 = vld [vmem:[#allocation4 + $0x288] ss:$16 sps:$4 sm:$0xff]  }
  0xf2   : > { %1939 = vmatpush2.bf16.msra.mxu1 %v4016_v8  ;;  %1845 = vmatprep.subr.bf16.mxu0 %v4027_v19  ;;  %v4051_v8 = vld [vmem:[#allocation4 + $0x28c] ss:$16 sps:$4 sm:$0xff]   ;;  %v397_v19 = vld [vmem:[%s4614_s20 + $0xe0] sm:$0xff] }
  0xf3   : > { %1940 = vmatprep.subr.bf16.mxu1 %v4024_v18  ;;  %v4057_v18 = vld [vmem:[#allocation4 + $0x26c] ss:$16 sps:$4 sm:$0xff]  }
  0xf4   : > { %1706 = vmatmul.mubr.bf16.gmra.mxu0 %v4760_v23 }
  0xf5   : > { %1807 = vmatmul.mubr.bf16.gmra.mxu1 %v4762_v27  ;;  %1846 = vmatpush2.bf16.msra.mxu0 %v4025_v29  ;;  %v4798_v29 = vpack.c.bf16 %v403_v20, %v397_v19  ;;  %v4093_v19 = vld [vmem:[#allocation4 + $0x40c] ss:$16 sps:$4 sm:$0xff]  }
  0xf6   : > { %1941 = vmatpush2.bf16.msra.mxu1 %v4022_v26  ;;  %3442 = vmatprep.mubr.msk.bf16.mxu0 %vm1591_vm0, %v4764_v31  ;;  %v410_v26 = vld [vmem:[%s4614_s20 + $0x148] sm:$0xff] }
  0xf7   : > { %1942 = vmatprep.subr.bf16.mxu1 %v4030_v30  ;;  %2017 = vmatprep.subr.bf16.mxu0 %v4033_v32  ;;  %v416_v30 = vld [vmem:[%s4614_s20 + $0x178] sm:$0xff] }
  0xf8   : > { %1948 = vmatprep.mubr.bf16.mxu1 %v4632_v53  ;;  %v4045_v53 = vld [vmem:[#allocation4 + $0x2ac] ss:$16 sps:$4 sm:$0xff]   ;;  %v4058_v32 = vld [vmem:[#allocation4 + $0x4a8] ss:$16 sps:$4 sm:$0xff]  }
  0xfa   : > { %1943 = vmatpush2.bf16.msra.mxu1 %v4028_v33  ;;  %v4063_v33 = vld [vmem:[#allocation4 + $0x24c] ss:$16 sps:$4 sm:$0xff]  }
  0xfb   : > { %1944 = vmatprep.subr.bf16.mxu1 %v4036_v40  ;;  %v4064_v40 = vld [vmem:[#allocation4 + $0x488] ss:$16 sps:$4 sm:$0xff]  }
  0xfc   : > { %1848 = vmatmul.mubr.bf16.vlgmr.msra.gmra.mxu0 %v4773_v42 }
  0xfd   : > { %2018 = vmatpush1.bf16.msra.mxu0 %v4031_v41  ;;  %3443 = vmatprep.mubr.msk.bf16.mxu0 %vm1591_vm0, %v4777_v52  ;;  %v4801_v41 = vpack.c.bf16 %v416_v30, %v410_v26  ;;  %v433_v26 = vld [vmem:[%s4614_s20 + $0x200] sm:$0xff]  ;;  %v439_v30 = vld [vmem:[%s4614_s20 + $0x230] sm:$0xff] }
  0xfe   : > { %1945 = vmatpush2.bf16.msra.mxu1 %v4034_v48  ;;  %2019 = vmatprep.subr.bf16.mxu0 %v4039_v49  ;;  %v4075_v48 = vld [vmem:[#allocation4 + $0x46c] ss:$16 sps:$4 sm:$0xff]  }
  0xff   : > { %1946 = vmatprep.subr.bf16.mxu1 %v4042_v50  ;;  %v422_v49 = vld [vmem:[%s4614_s20 + $0x1a8] sm:$0xff]  ;;  %v428_v50 = vld [vmem:[%s4614_s20 + $0x1d8] sm:$0xff] }
 0x100   : > { %v4814_v59 = vpack.c.bf16 %v428_v50, %v422_v49  ;;  %v4103_v49 = vld [vmem:[#allocation4 + $0x568] ss:$16 sps:$4 sm:$0xff]   ;;  %v4111_v50 = vld [vmem:[#allocation4 + $0x54c] ss:$16 sps:$4 sm:$0xff]  }
 0x101   : > { %2020 = vmatpush1.bf16.msra.mxu0 %v4037_v51  ;;  %v4812_v51 = vpack.c.bf16 %v415_v46, %v409_v43  ;;  %v4094_v46 = vld [vmem:[#allocation4 + $0x388] ss:$16 sps:$4 sm:$0xff]  }
 0x102   : > { %1947 = vmatpush2.bf16.msra.mxu1 %v4040_v56  ;;  %2021 = vmatprep.subr.bf16.mxu0 %v4045_v53  ;;  %v4073_v56 = vld [vmem:[#allocation4 + $0x468] ss:$16 sps:$4 sm:$0xff]   ;;  %v4072_v53 = vld [vmem:[#allocation4 + $0x20c] ss:$16 sps:$4 sm:$0xff]  }
 0x103   : > { %2118 = vmatprep.subr.bf16.mxu1 %v4048_v61  ;;  %v4070_v61 = vld [vmem:[#allocation4 + $0x208] ss:$16 sps:$4 sm:$0xff]  }
 0x104   : > { %1858 = vmatmul.mubr.bf16.gmra.mxu0 %v4784_v62 }
 0x105   : > { %1949 = vmatmul.mubr.bf16.vlgmr.msra.gmra.mxu1 %v4644_v16  ;;  %2022 = vmatpush1.bf16.msra.mxu0 %v4043_v5  ;;  %v4055_v16 = vld [vmem:[#allocation4 + $0x268] ss:$16 sps:$4 sm:$0xff]   ;;  %v427_v5 = vld [vmem:[%s4614_s20 + $0x1d0] sm:$0xff] }
 0x106   : > { %2119 = vmatpush1.bf16.msra.mxu1 %v4046_v6  ;;  %2023 = vmatprep.subr.bf16.mxu0 %v4051_v8  ;;  %v4087_v6 = vld [vmem:[#allocation4 + $0x42c] ss:$16 sps:$4 sm:$0xff]  }
 0x107   : > { %2120 = vmatprep.subr.bf16.mxu1 %v4054_v9  ;;  %3444 = vmatprep.mubr.msk.bf16.mxu0 %vm1591_vm0, %v4788_v15  ;;  %v434_v8 = vld [vmem:[%s4614_s20 + $0x208] sm:$0xff]  ;;  %v440_v9 = vld [vmem:[%s4614_s20 + $0x238] sm:$0xff] }
 0x108   : > { %1958 = vmatprep.mubr.bf16.mxu1 %v4650_v24  ;;  %v4069_v24 = vld [vmem:[#allocation4 + $0x22c] ss:$16 sps:$4 sm:$0xff]   ;;  %v4827_v20 = vpack.c.bf16 %v440_v9, %v434_v8 }
 0x109   : > { %2024 = vmatpush1.bf16.msra.mxu0 %v4049_v11  ;;  %v4076_v11 = vld [vmem:[#allocation4 + $0x3e8] ss:$16 sps:$4 sm:$0xff]   ;;  %v4124_v8 = vld [vmem:[#allocation7 + $0x78] sm:$0xff]   ;;  %v4128_v9 = vld [vmem:[#allocation7 + $0x68] sm:$0xff]  }
 0x10a   : > { %2121 = vmatpush1.bf16.msra.mxu1 %v4052_v12  ;;  %2025 = vmatprep.subr.bf16.mxu0 %v4057_v18  ;;  %v4085_v12 = vld [vmem:[#allocation4 + $0x428] ss:$16 sps:$4 sm:$0xff]   ;;  %v4825_v18 = vpack.c.bf16 %v427_v5, %v421_v4  ;;  %v4123_v4 = vld [vmem:[#allocation4 + $0x50c] ss:$16 sps:$4 sm:$0xff]  }
 0x10b   : > { %2122 = vmatprep.subr.bf16.mxu1 %v4060_v22  ;;  %v4082_v22 = vld [vmem:[#allocation4 + $0x3c8] ss:$16 sps:$4 sm:$0xff]  }
 0x10c   : > { %1868 = vmatmul.mubr.bf16.gmra.mxu0 %v4798_v29  ;;  %v4112_v5 = vld [vmem:[#allocation4 + $0x328] ss:$16 sps:$4 sm:$0xff]  }
 0x10d   : > { %1959 = vmatmul.mubr.bf16.gmra.mxu1 %v4664_v35  ;;  %2026 = vmatpush1.bf16.msra.mxu0 %v4055_v16  ;;  %v4067_v35 = vld [vmem:[#allocation4 + $0x228] ss:$16 sps:$4 sm:$0xff]  }
 0x10e   : > { %2123 = vmatpush1.bf16.msra.mxu1 %v4058_v32  ;;  %2027 = vmatprep.subr.bf16.mxu0 %v4063_v33  ;;  %v4091_v16 = vld [vmem:[#allocation4 + $0x408] ss:$16 sps:$4 sm:$0xff]   ;;  %v4099_v32 = vld [vmem:[#allocation4 + $0x58c] ss:$16 sps:$4 sm:$0xff]  }
 0x10f   : > { %2124 = vmatprep.subr.bf16.mxu1 %v4066_v34  ;;  %3445 = vmatprep.mubr.msk.bf16.mxu0 %vm1591_vm0, %v4801_v41  ;;  %v446_v33 = vld [vmem:[%s4614_s20 + $0x268] sm:$0xff] }
 0x110   : > { %1968 = vmatprep.mubr.bf16.mxu1 %v4670_v44  ;;  %v4078_v44 = vld [vmem:[#allocation4 + $0x3ec] ss:$16 sps:$4 sm:$0xff]   ;;  %v4088_v34 = vld [vmem:[#allocation4 + $0x3a8] ss:$16 sps:$4 sm:$0xff]   ;;  %v4839_v43 = vpack.c.bf16 %v446_v33, %v446_v33 }
 0x111   : > { %2028 = vmatpush1.bf16.msra.mxu0 %v4061_v37  ;;  %v4097_v37 = vld [vmem:[#allocation4 + $0x588] ss:$16 sps:$4 sm:$0xff]  }
 0x112   : > { %2125 = vmatpush1.bf16.msra.mxu1 %v4064_v40  ;;  %2029 = vmatprep.subr.bf16.mxu0 %v4069_v24  ;;  %v4837_v40 = vpack.c.bf16 %v439_v30, %v433_v26  ;;  %v4096_v24 = vld [vmem:[#allocation4 + $0x38c] ss:$16 sps:$4 sm:$0xff]  }
 0x113   : > { %2126 = vmatprep.subr.bf16.mxu1 %v4075_v48  ;;  %v445_v48 = vld [vmem:[%s4614_s20 + $0x260] sm:$0xff] }
 0x114   : > { %1878 = vmatmul.mubr.bf16.gmra.mxu0 %v4812_v51 }
 0x115   : > { %1969 = vmatmul.mubr.bf16.gmra.mxu1 %v4684_v57  ;;  %2030 = vmatpush1.bf16.msra.mxu0 %v4067_v35  ;;  %v4084_v57 = vld [vmem:[#allocation4 + $0x3cc] ss:$16 sps:$4 sm:$0xff]   ;;  %v4100_v35 = vld [vmem:[#allocation4 + $0x368] ss:$16 sps:$4 sm:$0xff]  }
 0x116   : > { %2127 = vmatpush1.bf16.msra.mxu1 %v4073_v56  ;;  %2031 = vmatprep.subr.bf16.mxu0 %v4072_v53  ;;  %v4847_v56 = vpack.c.bf16 %v445_v48, %v445_v48  ;;  %v4108_v53 = vld [vmem:[#allocation4 + $0x34c] ss:$16 sps:$4 sm:$0xff]  }
 0x117   : > { %3446 = vmatprep.mubr.msk.bf16.mxu0 %vm1591_vm0, %v4814_v59  ;;  %1978 = vmatprep.mubr.bf16.mxu1 %v4690_v2  ;;  %v4090_v2 = vld [vmem:[#allocation4 + $0x3ac] ss:$16 sps:$4 sm:$0xff]  }
 0x118   : > { %2128 = vmatprep.subr.bf16.mxu1 %v4081_v60  ;;  %v4109_v60 = vld [vmem:[#allocation4 + $0x548] ss:$16 sps:$4 sm:$0xff]  }
 0x119   : > { %2032 = vmatpush1.bf16.msra.mxu0 %v4070_v61  ;;  %v4106_v61 = vld [vmem:[#allocation4 + $0x348] ss:$16 sps:$4 sm:$0xff]  }
 0x11a   : > { %2129 = vmatpush1.bf16.msra.mxu1 %v4079_v1  ;;  %2033 = vmatprep.subr.bf16.mxu0 %v4078_v44  ;;  %v4114_v1 = vld [vmem:[#allocation4 + $0x32c] ss:$16 sps:$4 sm:$0xff]   ;;  %v4121_v44 = vld [vmem:[#allocation4 + $0x508] ss:$16 sps:$4 sm:$0xff]  }
 0x11b   : > { %2130 = vmatprep.subr.bf16.mxu1 %v4087_v6  ;;  %v4120_v6 = vld [vmem:[#allocation4 + $0x30c] ss:$16 sps:$4 sm:$0xff]  }
 0x11c   : > { %1888 = vmatmul.mubr.bf16.gmra.mxu0 %v4825_v18 }
 0x11d   : > { %1979 = vmatmul.mubr.bf16.gmra.mxu1 %v4704_v13  ;;  %2034 = vmatpush2.bf16.msra.mxu0 %v4076_v11  ;;  %v4105_v13 = vld [vmem:[#allocation4 + $0x56c] ss:$16 sps:$4 sm:$0xff]   ;;  %v4130_v11 = vld [vmem:[#allocation7 + $0x60] sm:$0xff]  }
 0x11e   : > { %2131 = vmatpush1.bf16.msra.mxu1 %v4085_v12  ;;  %2035 = vmatprep.subr.bf16.mxu0 %v4084_v57 }
 0x11f   : > { %3447 = vmatprep.mubr.msk.bf16.mxu0 %vm1591_vm0, %v4827_v20  ;;  %1988 = vmatprep.mubr.bf16.mxu1 %v4710_v21  ;;  %v4102_v21 = vld [vmem:[#allocation4 + $0x36c] ss:$16 sps:$4 sm:$0xff]  }
 0x120   : > { %2132 = vmatprep.subr.bf16.mxu1 %v4093_v19 }
 0x121   : > { %2036 = vmatpush2.bf16.msra.mxu0 %v4082_v22 }
 0x122   : > { %2133 = vmatpush1.bf16.msra.mxu1 %v4091_v16  ;;  %2037 = vmatprep.subr.bf16.mxu0 %v4090_v2 }
 0x123   : > { %2140 = vmatprep.subr.bf16.mxu1 %v4099_v32 }
 0x124   : > { %1898 = vmatmul.mubr.bf16.gmra.mxu0 %v4837_v40 }
 0x125   : > { %1989 = vmatmul.mubr.bf16.gmra.mxu1 %v4724_v38  ;;  %2038 = vmatpush2.bf16.msra.mxu0 %v4088_v34  ;;  %v4117_v38 = vld [vmem:[#allocation4 + $0x52c] ss:$16 sps:$4 sm:$0xff]  }
 0x126   : > { %2141 = vmatpush2.bf16.msra.mxu1 %v4097_v37  ;;  %2039 = vmatprep.subr.bf16.mxu0 %v4096_v24 }
 0x127   : > { %3448 = vmatprep.mubr.msk.bf16.mxu0 %vm1591_vm0, %v4839_v43  ;;  %1998 = vmatprep.mubr.bf16.mxu1 %v4730_v47  ;;  %v4115_v47 = vld [vmem:[#allocation4 + $0x528] ss:$16 sps:$4 sm:$0xff]  }
 0x128   : > { %2142 = vmatprep.subr.bf16.mxu1 %v4105_v13 }
 0x129   : > { %2040 = vmatpush2.bf16.msra.mxu0 %v4094_v46 }
 0x12a   : > { %2143 = vmatpush2.bf16.msra.mxu1 %v4103_v49  ;;  %2041 = vmatprep.subr.bf16.mxu0 %v4102_v21 }
 0x12b   : > { %2144 = vmatprep.subr.bf16.mxu1 %v4111_v50 }
 0x12c   : > { %1908 = vmatmul.mubr.bf16.gmra.mxu0 %v4847_v56 }
 0x12d   : > { %1999 = vmatmul.mubr.bf16.gmra.mxu1 %v4743_v63  ;;  %2042 = vmatpush2.bf16.msra.mxu0 %v4100_v35  ;;  %v4118_v63 = vld [vmem:[#allocation4 + $0x308] ss:$16 sps:$4 sm:$0xff]  }
 0x12e   : > { %2145 = vmatpush2.bf16.msra.mxu1 %v4109_v60  ;;  %2043 = vmatprep.subr.bf16.mxu0 %v4108_v53 }
 0x12f   : > { %2008 = vmatprep.mubr.bf16.mxu1 %v4748_v7  ;;  %2146 = vmatprep.subr.bf16.mxu1 %v4117_v38  ;;  %v4126_v7 = vld [vmem:[#allocation7 + $0x70] sm:$0xff]  }
 0x130   : > { %2049 = vmatprep.mubr.bf16.mxu0 %v4634_v54  ;;  %v4125_v54 = vld [vmem:[#allocation7 + $0x38] sm:$0xff]  }
 0x131   : > { %2044 = vmatpush2.bf16.msra.mxu0 %v4106_v61 }
 0x132   : > { %2147 = vmatpush2.bf16.msra.mxu1 %v4115_v47  ;;  %2045 = vmatprep.subr.bf16.mxu0 %v4114_v1  ;;  %v671_v1 = vlaneseq }
 0x133   : > { %2148 = vmatprep.subr.bf16.mxu1 %v4123_v4 }
 0x135   : > { %2009 = vmatmul.mubr.bf16.gmra.mxu1 %v4760_v23  ;;  %2046 = vmatpush2.bf16.msra.mxu0 %v4112_v5  ;;  %v4127_v23 = vld [vmem:[#allocation7 + $0x30] sm:$0xff]  }
 0x136   : > { %2149 = vmatpush2.bf16.msra.mxu1 %v4121_v44  ;;  %2047 = vmatprep.subr.bf16.mxu0 %v4120_v6  ;;  %v4970_v6 = vshrl.u32 %v671_v1, 7 }
 0x137   : > { %3449 = vmatprep.mubr.msk.bf16.mxu1 %vm1591_vm0, %v4764_v31  ;;  %3686 = vmatprep.subr.bf16.mxu1 %v4124_v8  ;;  %v4129_v31 = vld [vmem:[#allocation7 + $0x28] sm:$0xff]  }
 0x138   : > { %5378 = vst [vmem:[#allocation14_spill] sm:$0xff] %v4970_v6 }
 0x139   : > { %2048 = vmatpush2.bf16.msra.mxu0 %v4118_v63 }
 0x13a   : > { %3511 = vmatprep.subr.bf16.mxu0 %v4124_v8 }
 0x13c   : > { %2050 = vmatmul.mubr.bf16.vlgmr.msra.gmra.mxu0 %v4646_v17  ;;  %v4131_v17 = vld [vmem:[#allocation7 + $0x20] sm:$0xff]  }
 0x13d   : > { %2151 = vmatmul.mubr.bf16.vlgmr.msra.gmra.mxu1 %v4773_v42  ;;  %2059 = vmatprep.mubr.bf16.mxu0 %v4652_v25  ;;  %v4132_v25 = vld [vmem:[#allocation7 + $0x58] sm:$0xff]  }
 0x13e   : > { %3450 = vmatprep.mubr.msk.bf16.mxu1 %vm1591_vm0, %v4777_v52  ;;  %3512 = vmatpush3.bf16.msra.mxu0 %v4125_v54  ;;  %v4133_v42 = vld [vmem:[#allocation7 + $0x18] sm:$0xff]   ;;  %v4134_v52 = vld [vmem:[#allocation7 + $0x50] sm:$0xff]  }
 0x13f   : > { %3694 = vmatpush3.bf16.msra.mxu1 %v4125_v54  ;;  %3513 = vmatprep.subr.bf16.mxu0 %v4126_v7 }
 0x140   : > { %3687 = vmatprep.subr.bf16.mxu1 %v4126_v7 }
 0x142   : > { %3514 = vmatpush3.bf16.msra.mxu0 %v4127_v23 }
 0x143   : > { %3695 = vmatpush3.bf16.msra.mxu1 %v4127_v23  ;;  %3515 = vmatprep.subr.bf16.mxu0 %v4128_v9  ;;  %v677_v23 = vsub.s32 1, %v4970_v6 }
 0x144   : > { %3688 = vmatprep.subr.bf16.mxu1 %v4128_v9  ;;  %2060 = vmatmul.mubr.bf16.gmra.mxu0 %v4666_v36  ;;  %v4135_v36 = vld [vmem:[#allocation7 + $0x10] sm:$0xff]   ;;  %v673_v9 = vsub.s32 0, %v4970_v6 }
 0x145   : > { %2161 = vmatmul.mubr.bf16.gmra.mxu1 %v4784_v62  ;;  %2069 = vmatprep.mubr.bf16.mxu0 %v4672_v45  ;;  %v4136_v45 = vld [vmem:[#allocation7 + $0x48] sm:$0xff]  }
 0x146   : > { %3451 = vmatprep.mubr.msk.bf16.mxu1 %vm1591_vm0, %v4788_v15  ;;  %3516 = vmatpush3.bf16.msra.mxu0 %v4129_v31  ;;  %v4137_v62 = vld [vmem:[#allocation7 + $0x8] sm:$0xff]   ;;  %v4138_v15 = vld [vmem:[#allocation7 + $0x40] sm:$0xff]  }
 0x147   : > { %3696 = vmatpush3.bf16.msra.mxu1 %v4129_v31  ;;  %3517 = vmatprep.subr.bf16.mxu0 %v4130_v11 }
 0x148   : > { %3689 = vmatprep.subr.bf16.mxu1 %v4130_v11 }
 0x14a   : > { %3518 = vmatpush3.bf16.msra.mxu0 %v4131_v17 }
 0x14b   : > { %3697 = vmatpush3.bf16.msra.mxu1 %v4131_v17  ;;  %3519 = vmatprep.subr.bf16.mxu0 %v4132_v25  ;;  %v4986_v17 = vld [vmem:[#allocation6] sm:$0xf] }
 0x14c   : > { %3690 = vmatprep.subr.bf16.mxu1 %v4132_v25  ;;  %2070 = vmatmul.mubr.bf16.gmra.mxu0 %v4686_v58  ;;  %v4139_v58 = vld [vmem:[#allocation7] sm:$0xff]   ;;  %5381 = vst [vmem:[#allocation17_spill] sm:$0xff] %v4986_v17 }
 0x14d   : > { %2171 = vmatmul.mubr.bf16.gmra.mxu1 %v4798_v29  ;;  %2079 = vmatprep.mubr.bf16.mxu0 %v4692_v3  ;;  %v4140_v3 = vld [vmem:[#allocation7 + $0xf8] sm:$0xff]  }
 0x14e   : > { %3452 = vmatprep.mubr.msk.bf16.mxu1 %vm1591_vm0, %v4801_v41  ;;  %3520 = vmatpush3.bf16.msra.mxu0 %v4133_v42 }
 0x14f   : > { %3698 = vmatpush3.bf16.msra.mxu1 %v4133_v42  ;;  %3521 = vmatprep.subr.bf16.mxu0 %v4134_v52 }
 0x150   : > { %3691 = vmatprep.subr.bf16.mxu1 %v4134_v52  ;;  %v4993_v52 = vrot.slane %v4986_v17, %v677_v23 }
 0x152   : > { %3522 = vmatpush3.bf16.msra.mxu0 %v4135_v36 }
 0x153   : > { %3699 = vmatpush3.bf16.msra.mxu1 %v4135_v36  ;;  %3523 = vmatprep.subr.bf16.mxu0 %v4136_v45  ;;  %v4996_v36 = vrot.slane %v4986_v17, %v673_v9 }
 0x154   : > { %3692 = vmatprep.subr.bf16.mxu1 %v4136_v45  ;;  %2080 = vmatmul.mubr.bf16.gmra.mxu0 %v4706_v14 }
 0x155   : > { %2181 = vmatmul.mubr.bf16.gmra.mxu1 %v4812_v51  ;;  %2089 = vmatprep.mubr.bf16.mxu0 %v4713_v28 }
 0x156   : > { %3453 = vmatprep.mubr.msk.bf16.mxu1 %vm1591_vm0, %v4814_v59  ;;  %3524 = vmatpush3.bf16.msra.mxu0 %v4137_v62 }
 0x157   : > { %3700 = vmatpush3.bf16.msra.mxu1 %v4137_v62  ;;  %3525 = vmatprep.subr.bf16.mxu0 %v4138_v15 }
 0x158   : > { %3693 = vmatprep.subr.bf16.mxu1 %v4138_v15 }
 0x15a   : > { %3526 = vmatpush3.bf16.msra.mxu0 %v4139_v58 }
 0x15b   : > { %3701 = vmatpush3.bf16.msra.mxu1 %v4139_v58 }
 0x15c   : > { %2090 = vmatmul.mubr.bf16.gmra.mxu0 %v4726_v39  ;;  %3569 = vmatprep.subr.bf16.mxu1 %v4140_v3 }
 0x15d   : > { %2191 = vmatmul.mubr.bf16.gmra.mxu1 %v4825_v18  ;;  %2099 = vmatprep.mubr.bf16.mxu0 %v4734_v55 }
 0x15e   : > { %3454 = vmatprep.mubr.msk.bf16.mxu1 %vm1591_vm0, %v4827_v20 }
 0x164   : > { %2100 = vmatmul.mubr.bf16.gmra.mxu0 %v4745_v0 }
 0x165   : > { %2201 = vmatmul.mubr.bf16.gmra.mxu1 %v4837_v40  ;;  %2109 = vmatprep.mubr.bf16.mxu0 %v4750_v10 }
 0x166   : > { %3455 = vmatprep.mubr.msk.bf16.mxu1 %vm1591_vm0, %v4839_v43 }
 0x16c   : > { %2110 = vmatmul.mubr.bf16.gmra.mxu0 %v4762_v27 }
 0x16d   : > { %2211 = vmatmul.mubr.bf16.gmra.mxu1 %v4847_v56 }
 0x184   : > { %v4888_v14 = vpop.f32.mrf.mxu0 }
 0x185   : > { %v4890_v28 = vpop.f32.mrf.mxu1  ;;  %v1648_v6 = vadd.f32 %v4888_v14, %v4996_v36 }
 0x186   : > { %v1649_v39 = vpop.f32.mrf.mxu0 }
 0x187   : > { %v4892_v55 = vpop.f32.mrf.mxu1  ;;  %v1650_v3 = vadd.f32 %v1649_v39, %v4993_v52 }
 0x188   : > { %v1651_v0 = vpop.f32.mrf.mxu0 }
 0x189   : > { %v4894_v29 = vpop.f32.mrf.mxu1  ;;  %v1652_v1 = vadd.f32 %v1651_v0, %v4996_v36  ;;  %v1751_v23 = vadd.f32 %v4892_v55, %v1650_v3 }
 0x18a   : > { %v1653_v10 = vpop.f32.mrf.mxu0 }
 0x18b   : > { %v4896_v41 = vpop.f32.mrf.mxu1  ;;  %v1753_v9 = vadd.f32 %v4894_v29, %v1652_v1 }
 0x18c   : > { %v4898_v51 = vpop.f32.mrf.mxu0 }
 0x18d   : > { %v4900_v59 = vpop.f32.mrf.mxu1  ;;  %v1658_v55 = vadd.f32 %v4898_v51, %v4996_v36 }
 0x18e   : > { %v4902_v27 = vpop.f32.mrf.mxu0 }
 0x18f   : > { %v4904_v12 = vpop.f32.mrf.mxu1  ;;  %v1660_v14 = vadd.f32 %v4902_v27, %v4993_v52  ;;  %v1759_v51 = vadd.f32 %v4900_v59, %v1658_v55 }
 0x190   : > { %v4906_v18 = vpop.f32.mrf.mxu0 }
 0x191   : > { %v4908_v57 = vpop.f32.mrf.mxu1  ;;  %v1761_v27 = vadd.f32 %v4904_v12, %v1660_v14 }
 0x192   : > { %v4910_v19 = vpop.f32.mrf.mxu0 }
 0x193   : > { %v4912_v20 = vpop.f32.mrf.mxu1 }
 0x194   : > { %v4914_v22 = vpop.f32.mrf.mxu0 }
 0x195   : > { %v4916_v26 = vpop.f32.mrf.mxu1 }
 0x196   : > { %v4918_v30 = vpop.f32.mrf.mxu0 }
 0x197   : > { %v4920_v16 = vpop.f32.mrf.mxu1  ;;  %v1670_v12 = vadd.f32 %v4918_v30, %v4993_v52 }
 0x198   : > { %v4922_v2 = vpop.f32.mrf.mxu0 }
 0x199   : > { %v4924_v32 = vpop.f32.mrf.mxu1  ;;  %v1672_v59 = vadd.f32 %v4922_v2, %v4996_v36  ;;  %v1771_v30 = vadd.f32 %v4920_v16, %v1670_v12 }
 0x19a   : > { %v4926_v33 = vpop.f32.mrf.mxu0 }
 0x19b   : > { %v4928_v34 = vpop.f32.mrf.mxu1  ;;  %v1674_v55 = vadd.f32 %v4926_v33, %v4993_v52  ;;  %v1773_v2 = vadd.f32 %v4924_v32, %v1672_v59 }
 0x19c   : > { %v4930_v37 = vpop.f32.mrf.mxu0 }
 0x19d   : > { %v4932_v40 = vpop.f32.mrf.mxu1 }
 0x19e   : > { %v4934_v24 = vpop.f32.mrf.mxu0 }
 0x19f   : > { %v4936_v13 = vpop.f32.mrf.mxu1  ;;  %v1680_v16 = vadd.f32 %v4934_v24, %v4993_v52 }
 0x1a0   : > { %v4938_v43 = vpop.f32.mrf.mxu0 }
 0x1a1   : > { %v4940_v46 = vpop.f32.mrf.mxu1  ;;  %v1781_v24 = vadd.f32 %v4936_v13, %v1680_v16 }
 0x1a2   : > { %v4942_v48 = vpop.f32.mrf.mxu0 }
 0x1a3   : > { %v4944_v49 = vpop.f32.mrf.mxu1 }
 0x1a4   : > { %v4946_v21 = vpop.f32.mrf.mxu0 }
 0x1a5   : > { %v4948_v50 = vpop.f32.mrf.mxu1 }
 0x1a6   : > { %v4950_v35 = vpop.f32.mrf.mxu0 }
 0x1a7   : > { %v4952_v56 = vpop.f32.mrf.mxu1  ;;  %v1690_v13 = vadd.f32 %v4950_v35, %v4993_v52 }
 0x1a8   : > { %v4954_v53 = vpop.f32.mrf.mxu0 }
 0x1a9   : > { %v4956_v60 = vpop.f32.mrf.mxu1  ;;  %v1791_v35 = vadd.f32 %v4952_v56, %v1690_v13 }
 0x1aa   : > { %v4958_v38 = vpop.f32.mrf.mxu0 }
 0x1ab   : > { %v4960_v61 = vpop.f32.mrf.mxu1 }
 0x1ac   : > { %v4962_v47 = vpop.f32.mrf.mxu0 }
 0x1ad   : > { %v4964_v4 = vpop.f32.mrf.mxu1 }
 0x1ae   : > { %v4966_v5 = vpop.f32.mrf.mxu0 }
 0x1af   : > { %v4968_v44 = vpop.f32.mrf.mxu1  ;;  %v1700_v56 = vadd.f32 %v4966_v5, %v4993_v52 }
 0x1b0   : > { %v4972_v63 = vpop.f32.mrf.mxu0 }
 0x1b1   : > { %v4974_v8 = vpop.f32.mrf.mxu1  ;;  %v1801_v5 = vadd.f32 %v4968_v44, %v1700_v56 }
 0x1b2   : > { %v4976_v54 = vpop.f32.mrf.mxu0 }
 0x1b3   : > { %v4978_v7 = vpop.f32.mrf.mxu1 }
 0x1b4   : > { %v4982_v31 = vpop.f32.mrf.mxu0 }
 0x1b5   : > { %5379 = vst [vmem:[#allocation15_spill] sm:$0xff] %v4982_v31  ;;  %v4984_v11 = vpop.f32.mrf.mxu1 }
 0x1b6   : > { %5380 = vst [vmem:[#allocation16_spill] sm:$0xff] %v4984_v11  ;;  %v4988_v25 = vpop.f32.mrf.mxu0 }
 0x1b7   : > { %5382 = vst [vmem:[#allocation18_spill] sm:$0xff] %v4988_v25  ;;  %v4990_v42 = vpop.f32.mrf.mxu1 }
 0x1b8   : > { %5383 = vst [vmem:[#allocation19_spill] sm:$0xff] %v4990_v42  ;;  %v1711_v45 = vpop.f32.mrf.mxu0  ;;  %v1654_v42 = vadd.f32 %v1653_v10, %v4993_v52  ;;  %v1662_v10 = vadd.f32 %v4906_v18, %v4996_v36 }
 0x1b9   : > { %v1812_v62 = vpop.f32.mrf.mxu1  ;;  %v1749_v45 = vadd.f32 %v4890_v28, %v1648_v6 }
 0x1ba   : > { %v1712_v15 = vpop.f32.mrf.mxu0  ;;  %v1763_v18 = vadd.f32 %v4908_v57, %v1662_v10 }
 0x1bb   : > { %v1813_v58 = vpop.f32.mrf.mxu1  ;;  %v1755_v15 = vadd.f32 %v4896_v41, %v1654_v42  ;;  %v1664_v41 = vadd.f32 %v4910_v19, %v4993_v52 }
 0x1bc   : > { %v1849_v11 = vpop.f32.mrf.mxu0  ;;  %v5385_v44 = vld [vmem:[#allocation15_spill] sm:$0xff] }
 0x1bd   : > { %v1850_v17 = vadd.f32 %v1849_v11, %v1749_v45 }
 0x1be   : > { %v1851_v31 = vpop.f32.mrf.mxu0 }
 0x1bf   : > { %v1852_v58 = vadd.f32 %v1851_v31, %v1751_v23  ;;  %v2219_v11 = vmax.f32 %v1850_v17, 0.0 }
 0x1c0   : > { %v1853_v62 = vpop.f32.mrf.mxu0 }
 0x1c1   : > { %v1854_v39 = vadd.f32 %v1853_v62, %v1753_v9  ;;  %v2220_v6 = vmax.f32 %v1852_v58, 0.0 }
 0x1c2   : > { %v1855_v0 = vpop.f32.mrf.mxu0 }
 0x1c3   : > { %v1856_v25 = vadd.f32 %v1855_v0, %v1755_v15  ;;  %v2223_v29 = vmax.f32 %v1854_v39, 0.0  ;;  %v1765_v15 = vadd.f32 %v4912_v20, %v1664_v41  ;;  %v1668_v0 = vadd.f32 %v4914_v22, %v4996_v36 }
 0x1c4   : > { %v1859_v3 = vpop.f32.mrf.mxu0 }
 0x1c5   : > { %v5013_v28 = vpop.f32.mrf.mxu1  ;;  %v2224_v31 = vmax.f32 %v1856_v25, 0.0  ;;  %v2271_v9 = vpack.c.bf16 %v2223_v29, %v2219_v11  ;;  %v1860_v17 = vadd.f32 %v1859_v3, %v1759_v51  ;;  %v1769_v22 = vadd.f32 %v4916_v26, %v1668_v0 }
 0x1c6   : > { %v1861_v42 = vpop.f32.mrf.mxu0  ;;  %v1682_v26 = vadd.f32 %v4938_v43, %v4996_v36 }
 0x1c7   : > { %v5017_v1 = vpop.f32.mrf.mxu1  ;;  %v2272_v23 = vpack.c.bf16 %v2224_v31, %v2220_v6  ;;  %v1862_v19 = vadd.f32 %v1861_v42, %v1761_v27  ;;  %v2227_v41 = vmax.f32 %v1860_v17, 0.0 }
 0x1c8   : > { %v1863_v45 = vpop.f32.mrf.mxu0  ;;  %v1783_v43 = vadd.f32 %v4940_v46, %v1682_v26 }
 0x1c9   : > { %v5022_v62 = vpop.f32.mrf.mxu1  ;;  %v1864_v58 = vadd.f32 %v1863_v45, %v1763_v18  ;;  %2594 = vmatprep.mubr.bf16.mxu0 %v2272_v23  ;;  %v2228_v29 = vmax.f32 %v1862_v19, 0.0  ;;  %v1775_v23 = vadd.f32 %v4928_v34, %v1674_v55  ;;  %v1678_v19 = vadd.f32 %v4930_v37, %v4996_v36 }
 0x1ca   : > { %v1865_v25 = vpop.f32.mrf.mxu0  ;;  %2595 = vmatmul.mubr.bf16.vlgmr.msra.gmra.mxu0 %v2271_v9 }
 0x1cb   : > { %v5025_v39 = vpop.f32.mrf.mxu1  ;;  %v1866_v57 = vadd.f32 %v1865_v25, %v1765_v15  ;;  %v2231_v14 = vmax.f32 %v1864_v58, 0.0  ;;  %v1684_v25 = vadd.f32 %v4942_v48, %v4993_v52  ;;  %v1779_v37 = vadd.f32 %v4932_v40, %v1678_v19 }
 0x1cc   : > { %v1869_v20 = vpop.f32.mrf.mxu0  ;;  %v1692_v40 = vadd.f32 %v4954_v53, %v4996_v36 }
 0x1cd   : > { %v5033_v10 = vpop.f32.mrf.mxu1  ;;  %v2232_v3 = vmax.f32 %v1866_v57, 0.0  ;;  %v2275_v42 = vpack.c.bf16 %v2231_v14, %v2227_v41  ;;  %v1870_v9 = vadd.f32 %v1869_v20, %v1769_v22  ;;  %v1785_v41 = vadd.f32 %v4944_v49, %v1684_v25 }
 0x1ce   : > { %v1871_v6 = vpop.f32.mrf.mxu0  ;;  %v1688_v22 = vadd.f32 %v4946_v21, %v4996_v36  ;;  %v1793_v53 = vadd.f32 %v4956_v60, %v1692_v40 }
 0x1cf   : > { %v5037_v31 = vpop.f32.mrf.mxu1  ;;  %v2276_v11 = vpack.c.bf16 %v2232_v3, %v2228_v29  ;;  %v1872_v33 = vadd.f32 %v1871_v6, %v1771_v30  ;;  %v2235_v57 = vmax.f32 %v1870_v9, 0.0 }
 0x1d0   : > { %v1873_v27 = vpop.f32.mrf.mxu0  ;;  %v1789_v21 = vadd.f32 %v4948_v50, %v1688_v22  ;;  %v1702_v50 = vadd.f32 %v4972_v63, %v4996_v36  ;;  %v5384_v22 = vld [vmem:[#allocation18_spill] sm:$0xff] }
 0x1d1   : > { %v5042_v18 = vpop.f32.mrf.mxu1  ;;  %v1874_v51 = vadd.f32 %v1873_v27, %v1773_v2  ;;  %2602 = vmatprep.mubr.bf16.mxu0 %v2276_v11  ;;  %v2236_v12 = vmax.f32 %v1872_v33, 0.0 }
 0x1d2   : > { %v1875_v45 = vpop.f32.mrf.mxu0  ;;  %2603 = vmatmul.mubr.bf16.gmra.mxu0 %v2275_v42  ;;  %v1803_v63 = vadd.f32 %v4974_v8, %v1702_v50  ;;  %v1708_v8 = vadd.f32 %v5385_v44, %v4996_v36  ;;  %v4145_v50 = vld [vmem:[#allocation7 + $0xa8] sm:$0xff]  }
 0x1d3   : > { %v5045_v15 = vpop.f32.mrf.mxu1  ;;  %v1876_v32 = vadd.f32 %v1875_v45, %v1775_v23  ;;  %v2239_v58 = vmax.f32 %v1874_v51, 0.0  ;;  %v1694_v23 = vadd.f32 %v4958_v38, %v4993_v52 }
 0x1d4   : > { %v1879_v34 = vpop.f32.mrf.mxu0 }
 0x1d5   : > { %v5053_v17 = vpop.f32.mrf.mxu1  ;;  %v2240_v59 = vmax.f32 %v1876_v32, 0.0  ;;  %v2279_v55 = vpack.c.bf16 %v2239_v58, %v2235_v57  ;;  %v1880_v30 = vadd.f32 %v1879_v34, %v1779_v37  ;;  %v1795_v34 = vadd.f32 %v4960_v61, %v1694_v23 }
 0x1d6   : > { %v1881_v0 = vpop.f32.mrf.mxu0 }
 0x1d7   : > { %v5057_v14 = vpop.f32.mrf.mxu1  ;;  %v2280_v20 = vpack.c.bf16 %v2240_v59, %v2236_v12  ;;  %v1882_v48 = vadd.f32 %v1881_v0, %v1781_v24  ;;  %v2243_v9 = vmax.f32 %v1880_v30, 0.0  ;;  %v1698_v0 = vadd.f32 %v4962_v47, %v4996_v36  ;;  %v4141_v30 = vld [vmem:[#allocation7 + $0xb8] sm:$0xff]  }
 0x1d8   : > { %v1883_v29 = vpop.f32.mrf.mxu0 }
 0x1d9   : > { %v5062_v3 = vpop.f32.mrf.mxu1  ;;  %v1884_v6 = vadd.f32 %v1883_v29, %v1783_v43  ;;  %2610 = vmatprep.mubr.bf16.mxu0 %v2280_v20  ;;  %v2244_v33 = vmax.f32 %v1882_v48, 0.0  ;;  %v1704_v20 = vadd.f32 %v4976_v54, %v4993_v52  ;;  %v1799_v47 = vadd.f32 %v4964_v4, %v1698_v0 }
 0x1da   : > { %v1885_v2 = vpop.f32.mrf.mxu0  ;;  %2611 = vmatmul.mubr.bf16.gmra.mxu0 %v2279_v55 }
 0x1db   : > { %v5065_v11 = vpop.f32.mrf.mxu1  ;;  %v1886_v46 = vadd.f32 %v1885_v2, %v1785_v41  ;;  %v2247_v42 = vmax.f32 %v1884_v6, 0.0  ;;  %v1805_v54 = vadd.f32 %v4978_v7, %v1704_v20  ;;  %v4146_v20 = vld [vmem:[#allocation7 + $0xe0] sm:$0xff]  }
 0x1dc   : > { %v1889_v49 = vpop.f32.mrf.mxu0 }
 0x1dd   : > { %v5073_v27 = vpop.f32.mrf.mxu1  ;;  %v2248_v51 = vmax.f32 %v1886_v46, 0.0  ;;  %v2283_v32 = vpack.c.bf16 %v2247_v42, %v2243_v9  ;;  %v1890_v12 = vadd.f32 %v1889_v49, %v1789_v21  ;;  %v4142_v46 = vld [vmem:[#allocation7 + $0xf0] sm:$0xff]   ;;  %v1710_v42 = vadd.f32 %v5384_v22, %v4993_v52  ;;  %v4144_v52 = vld [vmem:[#allocation7 + $0xe8] sm:$0xff]  }
 0x1de   : > { %v1891_v45 = vpop.f32.mrf.mxu0 }
 0x1df   : > { %v5077_v16 = vpop.f32.mrf.mxu1  ;;  %v2284_v26 = vpack.c.bf16 %v2248_v51, %v2244_v33  ;;  %v1892_v38 = vadd.f32 %v1891_v45, %v1791_v35  ;;  %v2251_v29 = vmax.f32 %v1890_v12, 0.0  ;;  %v4143_v45 = vld [vmem:[#allocation7 + $0xb0] sm:$0xff]  }
 0x1e0   : > { %v1893_v19 = vpop.f32.mrf.mxu0 }
 0x1e1   : > { %v5082_v58 = vpop.f32.mrf.mxu1  ;;  %v1894_v25 = vadd.f32 %v1893_v19, %v1793_v53  ;;  %2618 = vmatprep.mubr.bf16.mxu0 %v2284_v26  ;;  %v2252_v37 = vmax.f32 %v1892_v38, 0.0  ;;  %v5386_v26 = vld [vmem:[#allocation19_spill] sm:$0xff] }
 0x1e2   : > { %v1895_v59 = vpop.f32.mrf.mxu0  ;;  %2619 = vmatmul.mubr.bf16.gmra.mxu0 %v2283_v32  ;;  %v1811_v21 = vadd.f32 %v5386_v26, %v1710_v42 }
 0x1e3   : > { %v5085_v57 = vpop.f32.mrf.mxu1  ;;  %v1896_v60 = vadd.f32 %v1895_v59, %v1795_v34  ;;  %v2255_v24 = vmax.f32 %v1894_v25, 0.0  ;;  %v5387_v34 = vld [vmem:[#allocation16_spill] sm:$0xff] }
 0x1e4   : > { %v1899_v61 = vpop.f32.mrf.mxu0  ;;  %v1809_v36 = vadd.f32 %v5387_v34, %v1708_v8  ;;  %v4153_v34 = vld [vmem:[#allocation7 + $0x88] sm:$0xff]  }
 0x1e5   : > { %v5093_v43 = vpop.f32.mrf.mxu1  ;;  %v2256_v55 = vmax.f32 %v1896_v60, 0.0  ;;  %v2287_v2 = vpack.c.bf16 %v2255_v24, %v2251_v29  ;;  %v1900_v33 = vadd.f32 %v1899_v61, %v1799_v47  ;;  %v5388_v47 = vld [vmem:[#allocation14_spill] sm:$0xff] }
 0x1e6   : > { %v1901_v41 = vpop.f32.mrf.mxu0 }
 0x1e7   : > { %v5097_v48 = vpop.f32.mrf.mxu1  ;;  %v2288_v6 = vpack.c.bf16 %v2256_v55, %v2252_v37  ;;  %v1902_v49 = vadd.f32 %v1901_v41, %v1801_v5  ;;  %v2259_v38 = vmax.f32 %v1900_v33, 0.0  ;;  %v4147_v5 = vld [vmem:[#allocation7 + $0xa0] sm:$0xff]  }
 0x1e8   : > { %v1903_v13 = vpop.f32.mrf.mxu0 }
 0x1e9   : > { %v5102_v40 = vpop.f32.mrf.mxu1  ;;  %v1904_v23 = vadd.f32 %v1903_v13, %v1803_v63  ;;  %2626 = vmatprep.mubr.bf16.mxu1 %v2288_v6  ;;  %v2260_v32 = vmax.f32 %v1902_v49, 0.0  ;;  %v681_v13 = vsub.s32 2, %v5388_v47  ;;  %v4150_v49 = vld [vmem:[#allocation7 + $0xd0] sm:$0xff]  }
 0x1ea   : > { %v1905_v51 = vpop.f32.mrf.mxu0  ;;  %2627 = vmatmul.mubr.bf16.vlgmr.msra.gmra.mxu1 %v2287_v2  ;;  %v685_v2 = vsub.s32 3, %v5388_v47 }
 0x1eb   : > { %v5109_v9 = vpop.f32.mrf.mxu1  ;;  %v1906_v4 = vadd.f32 %v1905_v51, %v1805_v54  ;;  %3570 = vmatpush3.bf16.msra.mxu1 %v4141_v30  ;;  %v2263_v35 = vmax.f32 %v1904_v23, 0.0  ;;  %v4148_v30 = vld [vmem:[#allocation7 + $0xd8] sm:$0xff]   ;;  %v5389_v23 = vld [vmem:[#allocation17_spill] sm:$0xff]  ;;  %v4151_v51 = vld [vmem:[#allocation7 + $0x90] sm:$0xff]  }
 0x1ec   : > { %v1909_v53 = vpop.f32.mrf.mxu0  ;;  %3571 = vmatprep.subr.bf16.mxu1 %v4142_v46  ;;  %v4149_v54 = vld [vmem:[#allocation7 + $0x98] sm:$0xff]   ;;  %v5128_v44 = vrot.slane %v5389_v23, %v685_v2  ;;  %v5131_v8 = vrot.slane %v5389_v23, %v681_v13 }
 0x1ed   : > { %v5111_v7 = vpop.f32.mrf.mxu1  ;;  %v2264_v19 = vmax.f32 %v1906_v4, 0.0  ;;  %v2291_v60 = vpack.c.bf16 %v2263_v35, %v2259_v38  ;;  %v1910_v0 = vadd.f32 %v1909_v53, %v1809_v36  ;;  %v4152_v35 = vld [vmem:[#allocation7 + $0xc8] sm:$0xff]  }
 0x1ee   : > { %v1911_v25 = vpop.f32.mrf.mxu0  ;;  %v1953_v53 = vadd.f32 %v5017_v1, %v5128_v44  ;;  %v1965_v2 = vadd.f32 %v5042_v18, %v5131_v8 }
 0x1ef   : > { %v5115_v12 = vpop.f32.mrf.mxu1  ;;  %v2292_v59 = vpack.c.bf16 %v2264_v19, %v2260_v32  ;;  %v1912_v56 = vadd.f32 %v1911_v25, %v1811_v21  ;;  %3572 = vmatpush3.bf16.msra.mxu1 %v4143_v45  ;;  %v2267_v63 = vmax.f32 %v1910_v0, 0.0  ;;  %v1955_v32 = vadd.f32 %v5022_v62, %v5131_v8 }
 0x1f0   : > { %v1913_v61 = vpop.f32.mrf.mxu0  ;;  %3573 = vmatprep.subr.bf16.mxu1 %v4144_v52  ;;  %v1951_v52 = vadd.f32 %v5013_v28, %v5131_v8 }
 0x1f1   : > { %v5117_v24 = vpop.f32.mrf.mxu1  ;;  %v2268_v37 = vmax.f32 %v1912_v56, 0.0  ;;  %2634 = vmatprep.mubr.bf16.mxu1 %v2292_v59  ;;  %v2295_v22 = vpack.c.bf16 %v2267_v63, %v2267_v63  ;;  %v4154_v59 = vld [vmem:[#allocation7 + $0xc0] sm:$0xff]   ;;  %v1957_v56 = vadd.f32 %v5025_v39, %v5128_v44  ;;  %v1961_v63 = vadd.f32 %v5033_v10, %v5131_v8 }
 0x1f2   : > { %2635 = vmatmul.mubr.bf16.gmra.mxu1 %v2291_v60  ;;  %v1914_v29 = vpop.f32.mrf.mxu0 }
 0x1f3   : > { %v5119_v55 = vpop.f32.mrf.mxu1  ;;  %v2296_v41 = vpack.c.bf16 %v2268_v37, %v2268_v37  ;;  %3574 = vmatpush3.bf16.msra.mxu1 %v4145_v50 }
 0x1f4   : > { %3575 = vmatprep.subr.bf16.mxu1 %v4146_v20  ;;  %v4155_v20 = vld [vmem:[#allocation7 + $0x80] sm:$0xff]  }
 0x1f5   : > { %v5121_v6 = vpop.f32.mrf.mxu1  ;;  %2642 = vmatprep.mubr.bf16.mxu1 %v2296_v41  ;;  %v1963_v41 = vadd.f32 %v5037_v31, %v5128_v44  ;;  %v1967_v31 = vadd.f32 %v5045_v15, %v5128_v44  ;;  %v1971_v15 = vadd.f32 %v5053_v17, %v5131_v8 }
 0x1f7   : > { %v5125_v46 = vpop.f32.mrf.mxu1  ;;  %3576 = vmatpush3.bf16.msra.mxu1 %v4147_v5 }
 0x1f8   : > { %3577 = vmatprep.subr.bf16.mxu1 %v4148_v30 }
 0x1f9   : > { %v2014_v42 = vpop.f32.mrf.mxu1 }
 0x1fa   : > { %2643 = vmatmul.mubr.bf16.gmra.mxu1 %v2295_v22 }
 0x1fb   : > { %v2015_v33 = vpop.f32.mrf.mxu1  ;;  %3578 = vmatpush3.bf16.msra.mxu1 %v4149_v54 }
 0x1fc   : > { %v2051_v4 = vpop.f32.mrf.mxu0  ;;  %3579 = vmatprep.subr.bf16.mxu1 %v4150_v49 }
 0x1fd   : > { %v2152_v45 = vpop.f32.mrf.mxu1  ;;  %v2052_v36 = vadd.f32 %v2051_v4, %v1951_v52 }
 0x1fe   : > { %v2053_v26 = vpop.f32.mrf.mxu0 }
 0x1ff   : > { %v2154_v21 = vpop.f32.mrf.mxu1  ;;  %v2054_v19 = vadd.f32 %v2053_v26, %v1953_v53  ;;  %3580 = vmatpush3.bf16.msra.mxu1 %v4151_v51  ;;  %v2153_v62 = vadd.f32 %v2152_v45, %v2052_v36 }
 0x200   : > { %v2055_v38 = vpop.f32.mrf.mxu0  ;;  %3581 = vmatprep.subr.bf16.mxu1 %v4152_v35 }
 0x201   : > { %v2156_v25 = vpop.f32.mrf.mxu1  ;;  %v2056_v1 = vadd.f32 %v2055_v38, %v1955_v32  ;;  %v2155_v28 = vadd.f32 %v2154_v21, %v2054_v19  ;;  %v2221_v42 = vmax.f32 %v2153_v62, 0.0  ;;  %v1973_v19 = vadd.f32 %v5057_v14, %v5128_v44 }
 0x202   : > { %v2057_v50 = vpop.f32.mrf.mxu0  ;;  %v1977_v14 = vadd.f32 %v5065_v11, %v5128_v44  ;;  %v1981_v11 = vadd.f32 %v5073_v27, %v5131_v8 }
 0x203   : > { %v2158_v60 = vpop.f32.mrf.mxu1  ;;  %v2157_v0 = vadd.f32 %v2156_v25, %v2056_v1  ;;  %v2058_v61 = vadd.f32 %v2057_v50, %v1957_v56  ;;  %3582 = vmatpush3.bf16.msra.mxu1 %v4153_v34  ;;  %v2222_v13 = vmax.f32 %v2155_v28, 0.0 }
 0x204   : > { %v2061_v37 = vpop.f32.mrf.mxu0  ;;  %3583 = vmatprep.subr.bf16.mxu1 %v4154_v59  ;;  %v1975_v59 = vadd.f32 %v5062_v3, %v5131_v8 }
 0x205   : > { %v2162_v29 = vpop.f32.mrf.mxu1  ;;  %v2159_v5 = vadd.f32 %v2158_v60, %v2058_v61  ;;  %v2225_v39 = vmax.f32 %v2157_v0, 0.0  ;;  %v2062_v49 = vadd.f32 %v2061_v37, %v1961_v63 }
 0x206   : > { %v2063_v30 = vpop.f32.mrf.mxu0 }
 0x207   : > { %v2164_v47 = vpop.f32.mrf.mxu1  ;;  %v2226_v54 = vmax.f32 %v2159_v5, 0.0  ;;  %v2064_v22 = vadd.f32 %v2063_v30, %v1963_v41  ;;  %3584 = vmatpush3.bf16.msra.mxu1 %v4155_v20  ;;  %v2273_v10 = vpack.c.bf16 %v2225_v39, %v2221_v42  ;;  %v2163_v18 = vadd.f32 %v2162_v29, %v2062_v49 }
 0x208   : > { %v2065_v23 = vpop.f32.mrf.mxu0  ;;  %v1985_v42 = vadd.f32 %v5082_v58, %v5131_v8 }
 0x209   : > { %v2166_v33 = vpop.f32.mrf.mxu1  ;;  %v2274_v51 = vpack.c.bf16 %v2226_v54, %v2222_v13  ;;  %v2066_v4 = vadd.f32 %v2065_v23, %v1965_v2  ;;  %v2165_v53 = vadd.f32 %v2164_v47, %v2064_v22  ;;  %v2229_v60 = vmax.f32 %v2163_v18, 0.0 }
 0x20a   : > { %v2067_v45 = vpop.f32.mrf.mxu0  ;;  %v1983_v47 = vadd.f32 %v5077_v16, %v5128_v44  ;;  %v1987_v16 = vadd.f32 %v5085_v57, %v5128_v44  ;;  %v1991_v57 = vadd.f32 %v5093_v43, %v5131_v8 }
 0x20b   : > { %v2168_v35 = vpop.f32.mrf.mxu1  ;;  %v2167_v52 = vadd.f32 %v2166_v33, %v2066_v4  ;;  %v2068_v26 = vadd.f32 %v2067_v45, %v1967_v31  ;;  %2682 = vmatprep.mubr.bf16.mxu1 %v2274_v51  ;;  %v2230_v56 = vmax.f32 %v2165_v53, 0.0 }
 0x20c   : > { %v2071_v21 = vpop.f32.mrf.mxu0  ;;  %2683 = vmatmul.mubr.bf16.vlgmr.msra.gmra.mxu1 %v2273_v10 }
 0x20d   : > { %v2172_v32 = vpop.f32.mrf.mxu1  ;;  %v2169_v34 = vadd.f32 %v2168_v35, %v2068_v26  ;;  %v2233_v36 = vmax.f32 %v2167_v52, 0.0  ;;  %v2072_v28 = vadd.f32 %v2071_v21, %v1971_v15 }
 0x20e   : > { %v2073_v38 = vpop.f32.mrf.mxu0 }
 0x20f   : > { %v2174_v25 = vpop.f32.mrf.mxu1  ;;  %v2234_v1 = vmax.f32 %v2169_v34, 0.0  ;;  %v2074_v50 = vadd.f32 %v2073_v38, %v1973_v19  ;;  %v2277_v37 = vpack.c.bf16 %v2233_v36, %v2229_v60  ;;  %v2173_v3 = vadd.f32 %v2172_v32, %v2072_v28 }
 0x210   : > { %v2075_v0 = vpop.f32.mrf.mxu0  ;;  %v1993_v34 = vadd.f32 %v5097_v48, %v5128_v44  ;;  %v1997_v48 = vadd.f32 %v5109_v9, %v5128_v44  ;;  %v2001_v9 = vadd.f32 %v5111_v7, %v5131_v8 }
 0x211   : > { %v2176_v61 = vpop.f32.mrf.mxu1  ;;  %v2278_v20 = vpack.c.bf16 %v2234_v1, %v2230_v56  ;;  %v2076_v62 = vadd.f32 %v2075_v0, %v1975_v59  ;;  %v2175_v41 = vadd.f32 %v2174_v25, %v2074_v50  ;;  %v2237_v31 = vmax.f32 %v2173_v3, 0.0 }
 0x212   : > { %v2077_v17 = vpop.f32.mrf.mxu0  ;;  %v1995_v59 = vadd.f32 %v5102_v40, %v5131_v8  ;;  %v2003_v3 = vadd.f32 %v5115_v12, %v5128_v44  ;;  %v2007_v12 = vadd.f32 %v5119_v55, %v5128_v44 }
 0x213   : > { %v2178_v29 = vpop.f32.mrf.mxu1  ;;  %v2177_v5 = vadd.f32 %v2176_v61, %v2076_v62  ;;  %v2078_v63 = vadd.f32 %v2077_v17, %v1977_v14  ;;  %2690 = vmatprep.mubr.bf16.mxu1 %v2278_v20  ;;  %v2238_v49 = vmax.f32 %v2175_v41, 0.0 }
 0x214   : > { %v2081_v39 = vpop.f32.mrf.mxu0  ;;  %2691 = vmatmul.mubr.bf16.gmra.mxu1 %v2277_v37 }
 0x215   : > { %v2182_v30 = vpop.f32.mrf.mxu1  ;;  %v2179_v2 = vadd.f32 %v2178_v29, %v2078_v63  ;;  %v2241_v13 = vmax.f32 %v2177_v5, 0.0  ;;  %v2082_v51 = vadd.f32 %v2081_v39, %v1981_v11  ;;  %v2005_v11 = vadd.f32 %v5117_v24, %v5131_v8 }
 0x216   : > { %v2083_v54 = vpop.f32.mrf.mxu0  ;;  %v2011_v24 = vadd.f32 %v5121_v6, %v5131_v8 }
 0x217   : > { %v2184_v22 = vpop.f32.mrf.mxu1  ;;  %v2242_v23 = vmax.f32 %v2179_v2, 0.0  ;;  %v2084_v33 = vadd.f32 %v2083_v54, %v1983_v47  ;;  %v2281_v53 = vpack.c.bf16 %v2241_v13, %v2237_v31  ;;  %v2183_v58 = vadd.f32 %v2182_v30, %v2082_v51 }
 0x218   : > { %v2085_v4 = vpop.f32.mrf.mxu0 }
 0x219   : > { %v2186_v10 = vpop.f32.mrf.mxu1  ;;  %v2282_v45 = vpack.c.bf16 %v2242_v23, %v2238_v49  ;;  %v2086_v35 = vadd.f32 %v2085_v4, %v1985_v42  ;;  %v2185_v26 = vadd.f32 %v2184_v22, %v2084_v33  ;;  %v2245_v60 = vmax.f32 %v2183_v58, 0.0 }
 0x21a   : > { %v2087_v27 = vpop.f32.mrf.mxu0 }
 0x21b   : > { %v2188_v52 = vpop.f32.mrf.mxu1  ;;  %v2187_v18 = vadd.f32 %v2186_v10, %v2086_v35  ;;  %v2088_v21 = vadd.f32 %v2087_v27, %v1987_v16  ;;  %2698 = vmatprep.mubr.bf16.mxu1 %v2282_v45  ;;  %v2246_v56 = vmax.f32 %v2185_v26, 0.0  ;;  %v2013_v26 = vadd.f32 %v5125_v46, %v5128_v44 }
 0x21c   : > { %v2091_v32 = vpop.f32.mrf.mxu0  ;;  %2699 = vmatmul.mubr.bf16.gmra.mxu1 %v2281_v53 }
 0x21d   : > { %v2192_v19 = vpop.f32.mrf.mxu1  ;;  %v2189_v15 = vadd.f32 %v2188_v52, %v2088_v21  ;;  %v2249_v36 = vmax.f32 %v2187_v18, 0.0  ;;  %v2092_v28 = vadd.f32 %v2091_v32, %v1991_v57 }
 0x21e   : > { %v2093_v38 = vpop.f32.mrf.mxu0 }
 0x21f   : > { %v2194_v25 = vpop.f32.mrf.mxu1  ;;  %v2250_v1 = vmax.f32 %v2189_v15, 0.0  ;;  %v2094_v50 = vadd.f32 %v2093_v38, %v1993_v34  ;;  %v2285_v62 = vpack.c.bf16 %v2249_v36, %v2245_v60  ;;  %v2193_v40 = vadd.f32 %v2192_v19, %v2092_v28  ;;  %v4156_v28 = vld [vmem:[#allocation9 + $0x38] sm:$0xff]  }
 0x220   : > { %v2095_v0 = vpop.f32.mrf.mxu0 }
 0x221   : > { %v2196_v61 = vpop.f32.mrf.mxu1  ;;  %v2286_v14 = vpack.c.bf16 %v2250_v1, %v2246_v56  ;;  %v2096_v20 = vadd.f32 %v2095_v0, %v1995_v59  ;;  %v2195_v17 = vadd.f32 %v2194_v25, %v2094_v50  ;;  %v2253_v42 = vmax.f32 %v2193_v40, 0.0 }
 0x222   : > { %v2097_v43 = vpop.f32.mrf.mxu0  ;;  %v4417_v0 = vmov 0.0  }
 0x223   : > { %v2198_v37 = vpop.f32.mrf.mxu1  ;;  %v2197_v29 = vadd.f32 %v2196_v61, %v2096_v20  ;;  %v2098_v41 = vadd.f32 %v2097_v43, %v1997_v48  ;;  %2706 = vmatprep.mubr.bf16.mxu1 %v2286_v14  ;;  %v2254_v13 = vmax.f32 %v2195_v17, 0.0  ;;  %3642 = vmatprep.subr.bf16.mxu0 %v4417_v0  ;;  %v4157_v61 = vld [vmem:[#allocation9 + $0x30] sm:$0xff]   ;;  %v4158_v48 = vld [vmem:[#allocation9 + $0x28] sm:$0xff]   ;;  %v4159_v14 = vld [vmem:[#allocation9 + $0x20] sm:$0xff]  }
 0x224   : > { %v2101_v5 = vpop.f32.mrf.mxu0  ;;  %2707 = vmatmul.mubr.bf16.gmra.mxu1 %v2285_v62  ;;  %3643 = vmatpush3.bf16.msra.mxu0 %v4156_v28  ;;  %v4160_v20 = vld [vmem:[#allocation9 + $0x18] sm:$0xff]   ;;  %v4161_v62 = vld [vmem:[#allocation9 + $0x10] sm:$0xff]   ;;  %v4162_v43 = vld [vmem:[#allocation9 + $0x8] sm:$0xff]  }
 0x225   : > { %v2202_v63 = vpop.f32.mrf.mxu1  ;;  %v2199_v39 = vadd.f32 %v2198_v37, %v2098_v41  ;;  %v2257_v30 = vmax.f32 %v2197_v29, 0.0  ;;  %v2102_v49 = vadd.f32 %v2101_v5, %v2001_v9  ;;  %3644 = vmatprep.subr.bf16.mxu0 %v4417_v0  ;;  %v4163_v37 = vld [vmem:[#allocation9] sm:$0xff]   ;;  %3658 = vmatprep.mubr.msk.bf16.mxu0 %vm4418_vm1, %v4417_v0 }
 0x226   : > { %v2103_v47 = vpop.f32.mrf.mxu0 }
 0x227   : > { %v2204_v2 = vpop.f32.mrf.mxu1  ;;  %v2258_v54 = vmax.f32 %v2199_v39, 0.0  ;;  %v2104_v22 = vadd.f32 %v2103_v47, %v2003_v3  ;;  %v2289_v4 = vpack.c.bf16 %v2257_v30, %v2253_v42  ;;  %v2203_v53 = vadd.f32 %v2202_v63, %v2102_v49 }
 0x228   : > { %v2105_v23 = vpop.f32.mrf.mxu0  ;;  %3645 = vmatpush3.bf16.msra.mxu0 %v4157_v61 }
 0x229   : > { %v2206_v33 = vpop.f32.mrf.mxu1  ;;  %v2290_v31 = vpack.c.bf16 %v2258_v54, %v2254_v13  ;;  %v2106_v51 = vadd.f32 %v2105_v23, %v2005_v11  ;;  %v2205_v16 = vadd.f32 %v2204_v2, %v2104_v22  ;;  %v2261_v57 = vmax.f32 %v2203_v53, 0.0  ;;  %3646 = vmatprep.subr.bf16.mxu0 %v4417_v0 }
 0x22a   : > { %v2107_v7 = vpop.f32.mrf.mxu0 }
 0x22b   : > { %v2208_v10 = vpop.f32.mrf.mxu1  ;;  %v2207_v45 = vadd.f32 %v2206_v33, %v2106_v51  ;;  %v2108_v35 = vadd.f32 %v2107_v7, %v2007_v12  ;;  %2714 = vmatprep.mubr.bf16.mxu1 %v2290_v31  ;;  %v2262_v19 = vmax.f32 %v2205_v16, 0.0 }
 0x22c   : > { %v2111_v27 = vpop.f32.mrf.mxu0  ;;  %2715 = vmatmul.mubr.bf16.gmra.mxu1 %v2289_v4  ;;  %3647 = vmatpush3.bf16.msra.mxu0 %v4158_v48 }
 0x22d   : > { %v2212_v52 = vpop.f32.mrf.mxu1  ;;  %v2209_v55 = vadd.f32 %v2208_v10, %v2108_v35  ;;  %v2265_v18 = vmax.f32 %v2207_v45, 0.0  ;;  %v2112_v21 = vadd.f32 %v2111_v27, %v2011_v24  ;;  %3648 = vmatprep.subr.bf16.mxu0 %v4417_v0  ;;  %v5208_v24 = vld [vmem:[%s5355_s4] ss:$0 sm:$0xff] }
 0x22e   : > { %v2113_v58 = vpop.f32.mrf.mxu0 }
 0x22f   : > { %v2214_v32 = vpop.f32.mrf.mxu1  ;;  %v2266_v34 = vmax.f32 %v2209_v55, 0.0  ;;  %v2114_v15 = vadd.f32 %v2113_v58, %v2013_v26  ;;  %v2293_v8 = vpack.c.bf16 %v2265_v18, %v2261_v57  ;;  %v2213_v59 = vadd.f32 %v2212_v52, %v2112_v21 }
 0x230   : > { %v2115_v36 = vpop.f32.mrf.mxu0  ;;  %3649 = vmatpush3.bf16.msra.mxu0 %v4159_v14 }
 0x231   : > { %v2216_v38 = vpop.f32.mrf.mxu1  ;;  %v2294_v25 = vpack.c.bf16 %v2266_v34, %v2262_v19  ;;  %v2215_v6 = vadd.f32 %v2214_v32, %v2114_v15  ;;  %v2269_v44 = vmax.f32 %v2213_v59, 0.0  ;;  %3650 = vmatprep.subr.bf16.mxu0 %v4417_v0 }
 0x232   : > { %v2116_v56 = vpop.f32.mrf.mxu0 }
 0x233   : > { %v2217_v1 = vpop.f32.mrf.mxu1  ;;  %v2270_v50 = vmax.f32 %v2215_v6, 0.0  ;;  %2722 = vmatprep.mubr.bf16.mxu1 %v2294_v25  ;;  %v2297_v60 = vpack.c.bf16 %v2269_v44, %v2269_v44 }
 0x234   : > { %2723 = vmatmul.mubr.bf16.gmra.mxu1 %v2293_v8  ;;  %3651 = vmatpush3.bf16.msra.mxu0 %v4160_v20 }
 0x235   : > { %v2298_v46 = vpack.c.bf16 %v2270_v50, %v2270_v50  ;;  %3652 = vmatprep.subr.bf16.mxu0 %v4417_v0 }
 0x237   : > { %2730 = vmatprep.mubr.bf16.mxu1 %v2298_v46 }
 0x238   : > { %3653 = vmatpush3.bf16.msra.mxu0 %v4161_v62 }
 0x239   : > { %3654 = vmatprep.subr.bf16.mxu0 %v4417_v0 }
 0x23c   : > { %2731 = vmatmul.mubr.bf16.gmra.mxu1 %v2297_v60  ;;  %3655 = vmatpush3.bf16.msra.mxu0 %v4162_v43 }
 0x23d   : > { %3656 = vmatprep.subr.bf16.mxu0 %v4417_v0 }
 0x240   : > { %3657 = vmatpush3.bf16.msra.mxu0 %v4163_v37 }
 0x28a   : > { %v3527_v17 = vpop.f32.mrf.mxu0 }
 0x28c   : > { %v3528_v41 = vpop.f32.mrf.mxu0 }
 0x28d   : > { %v3529_v35 = vadd.f32 %v3528_v41, %v3527_v17 }
 0x28e   : > { %v3530_v3 = vpop.f32.mrf.mxu0 }
 0x28f   : > { %v2597_v18 = vadd.f32 %v3529_v35, %v5208_v24 }
 0x290   : > { %v3531_v47 = vpop.f32.mrf.mxu0 }
 0x291   : > { %v3532_v27 = vadd.f32 %v3531_v47, %v3530_v3 }
 0x292   : > { %v3533_v54 = vpop.f32.mrf.mxu0 }
 0x293   : > { %v2600_v58 = vadd.f32 %v3532_v27, %v5208_v24 }
 0x294   : > { %v3534_v23 = vpop.f32.mrf.mxu0 }
 0x295   : > { %v3535_v57 = vadd.f32 %v3534_v23, %v3533_v54 }
 0x296   : > { %v3536_v51 = vpop.f32.mrf.mxu0 }
 0x297   : > { %v2605_v50 = vadd.f32 %v3535_v57, %v5208_v24 }
 0x298   : > { %v3537_v7 = vpop.f32.mrf.mxu0 }
 0x299   : > { %v3538_v25 = vadd.f32 %v3537_v7, %v3536_v51 }
 0x29a   : > { %v3539_v10 = vpop.f32.mrf.mxu0 }
 0x29b   : > { %v2608_v60 = vadd.f32 %v3538_v25, %v5208_v24 }
 0x29c   : > { %v3540_v16 = vpop.f32.mrf.mxu0 }
 0x29d   : > { %v3541_v20 = vadd.f32 %v3540_v16, %v3539_v10 }
 0x29e   : > { %v3542_v26 = vpop.f32.mrf.mxu0 }
 0x29f   : > { %v2613_v3 = vadd.f32 %v3541_v20, %v5208_v24 }
 0x2a0   : > { %v3543_v34 = vpop.f32.mrf.mxu0 }
 0x2a1   : > { %v3544_v37 = vadd.f32 %v3543_v34, %v3542_v26 }
 0x2a2   : > { %v3545_v56 = vpop.f32.mrf.mxu0 }
 0x2a3   : > { %v2616_v47 = vadd.f32 %v3544_v37, %v5208_v24 }
 0x2a4   : > { %v3546_v48 = vpop.f32.mrf.mxu0 }
 0x2aa   : > { %v3551_v29 = vpop.f32.mrf.mxu1 }
 0x2ac   : > { %v3552_v40 = vpop.f32.mrf.mxu1 }
 0x2ad   : > { %v5195_v5 = vadd.f32 %v3552_v40, %v3551_v29  ;;  %v3548_v40 = vpop.f32.mrf.mxu0 }
 0x2ae   : > { %v3554_v63 = vpop.f32.mrf.mxu1 }
 0x2af   : > { %v3549_v54 = vpop.f32.mrf.mxu0  ;;  %v2629_v34 = vadd.f32 %v5195_v5, %v5208_v24 }
 0x2b0   : > { %v3555_v39 = vpop.f32.mrf.mxu1 }
 0x2b1   : > { %v5197_v9 = vadd.f32 %v3555_v39, %v3554_v63 }
 0x2b2   : > { %v3557_v30 = vpop.f32.mrf.mxu1 }
 0x2b4   : > { %v3558_v2 = vpop.f32.mrf.mxu1 }
 0x2b5   : > { %v5199_v11 = vadd.f32 %v3558_v2, %v3557_v30 }
 0x2b6   : > { %v3560_v13 = vpop.f32.mrf.mxu1 }
 0x2b7   : > { %v2637_v5 = vadd.f32 %v5199_v11, %v5208_v24 }
 0x2b8   : > { %v3561_v22 = vpop.f32.mrf.mxu1 }
 0x2b9   : > { %v5201_v42 = vadd.f32 %v3561_v22, %v3560_v13 }
 0x2ba   : > { %v3563_v49 = vpop.f32.mrf.mxu1 }
 0x2bc   : > { %v3564_v33 = vpop.f32.mrf.mxu1 }
 0x2bd   : > { %v5203_v12 = vadd.f32 %v3564_v33, %v3563_v49  ;;  %v3547_v49 = vadd.f32 %v3546_v48, %v3545_v56 }
 0x2be   : > { %v3566_v31 = vpop.f32.mrf.mxu1 }
 0x2bf   : > { %v3550_v31 = vadd.f32 %v3549_v54, %v3548_v40  ;;  %v2621_v16 = vadd.f32 %v3547_v49, %v5208_v24 }
 0x2c0   : > { %v3567_v4 = vpop.f32.mrf.mxu1 }
 0x2cc   : > { %v3585_v45 = vpop.f32.mrf.mxu1 }
 0x2ce   : > { %v3586_v53 = vpop.f32.mrf.mxu1 }
 0x2cf   : > { %v3587_v52 = vadd.f32 %v3586_v53, %v3585_v45  ;;  %v2624_v53 = vadd.f32 %v3550_v31, %v5208_v24 }
 0x2d0   : > { %v3588_v55 = vpop.f32.mrf.mxu1 }
 0x2d1   : > { %v2685_v32 = vadd.f32 %v3587_v52, %v2597_v18 }
 0x2d2   : > { %v3589_v21 = vpop.f32.mrf.mxu1 }
 0x2d3   : > { %v3590_v19 = vadd.f32 %v3589_v21, %v3588_v55  ;;  %v2738_v6 = vmax.f32 %v2685_v32, 0.0 }
 0x2d4   : > { %v3591_v15 = vpop.f32.mrf.mxu1 }
 0x2d5   : > { %v2688_v36 = vadd.f32 %v3590_v19, %v2600_v58 }
 0x2d6   : > { %v3592_v38 = vpop.f32.mrf.mxu1 }
 0x2d7   : > { %v2739_v8 = vmax.f32 %v2688_v36, 0.0  ;;  %v3593_v59 = vadd.f32 %v3592_v38, %v3591_v15  ;;  %v2632_v36 = vadd.f32 %v5197_v9, %v5208_v24  ;;  %v2640_v9 = vadd.f32 %v5201_v42, %v5208_v24 }
 0x2d8   : > { %v3594_v1 = vpop.f32.mrf.mxu1 }
 0x2d9   : > { %v2751_v46 = vpack.c.bf16 %v2739_v8, %v2738_v6  ;;  %v2693_v28 = vadd.f32 %v3593_v59, %v2605_v50 }
 0x2da   : > { %v3595_v44 = vpop.f32.mrf.mxu1 }
 0x2db   : > { %v3596_v61 = vadd.f32 %v3595_v44, %v3594_v1  ;;  %3659 = vmatmul.mubr.bf16.vlgmr.msra.gmra.mxu0 %v2751_v46  ;;  %v2740_v17 = vmax.f32 %v2693_v28, 0.0 }
 0x2dc   : > { %v3597_v14 = vpop.f32.mrf.mxu1  ;;  %3662 = vmatprep.mubr.msk.bf16.mxu0 %vm4418_vm1, %v4417_v0 }
 0x2dd   : > { %v2696_v62 = vadd.f32 %v3596_v61, %v2608_v60 }
 0x2de   : > { %v3598_v43 = vpop.f32.mrf.mxu1 }
 0x2df   : > { %v2741_v29 = vmax.f32 %v2696_v62, 0.0  ;;  %v3599_v41 = vadd.f32 %v3598_v43, %v3597_v14  ;;  %v2645_v62 = vadd.f32 %v5203_v12, %v5208_v24 }
 0x2e0   : > { %v3600_v63 = vpop.f32.mrf.mxu1 }
 0x2e1   : > { %v2752_v39 = vpack.c.bf16 %v2741_v29, %v2740_v17  ;;  %v2701_v2 = vadd.f32 %v3599_v41, %v2613_v3  ;;  %v3489_v3 = vld [vmem:[%s5357_s6] ss:$0 sm:$0xff] }
 0x2e2   : > { %v3601_v30 = vpop.f32.mrf.mxu1 }
 0x2e3   : > { %v3602_v13 = vadd.f32 %v3601_v30, %v3600_v63  ;;  %3663 = vmatmul.mubr.bf16.gmra.mxu0 %v2752_v39  ;;  %v2742_v51 = vmax.f32 %v2701_v2, 0.0 }
 0x2e4   : > { %v3603_v22 = vpop.f32.mrf.mxu1  ;;  %3666 = vmatprep.mubr.msk.bf16.mxu0 %vm4418_vm1, %v4417_v0 }
 0x2e5   : > { %v2704_v23 = vadd.f32 %v3602_v13, %v2616_v47 }
 0x2e6   : > { %v3604_v33 = vpop.f32.mrf.mxu1 }
 0x2e7   : > { %v2743_v4 = vmax.f32 %v2704_v23, 0.0  ;;  %v3605_v7 = vadd.f32 %v3604_v33, %v3603_v22 }
 0x2e8   : > { %v3606_v10 = vpop.f32.mrf.mxu1 }
 0x2e9   : > { %v2753_v45 = vpack.c.bf16 %v2743_v4, %v2742_v51  ;;  %v2709_v27 = vadd.f32 %v3605_v7, %v2621_v16 }
 0x2ea   : > { %v3607_v35 = vpop.f32.mrf.mxu1 }
 0x2eb   : > { %v3608_v52 = vadd.f32 %v3607_v35, %v3606_v10  ;;  %3667 = vmatmul.mubr.bf16.gmra.mxu0 %v2753_v45  ;;  %v2744_v21 = vmax.f32 %v2709_v27, 0.0 }
 0x2ec   : > { %v3609_v26 = vpop.f32.mrf.mxu1  ;;  %3670 = vmatprep.mubr.msk.bf16.mxu0 %vm4418_vm1, %v4417_v0 }
 0x2ed   : > { %v2712_v55 = vadd.f32 %v3608_v52, %v2624_v53 }
 0x2ee   : > { %v3610_v18 = vpop.f32.mrf.mxu1 }
 0x2ef   : > { %v2745_v58 = vmax.f32 %v2712_v55, 0.0  ;;  %v3611_v32 = vadd.f32 %v3610_v18, %v3609_v26 }
 0x2f0   : > { %v3612_v19 = vpop.f32.mrf.mxu1 }
 0x2f1   : > { %v2754_v15 = vpack.c.bf16 %v2745_v58, %v2744_v21  ;;  %v2717_v38 = vadd.f32 %v3611_v32, %v2629_v34 }
 0x2f2   : > { %v3613_v57 = vpop.f32.mrf.mxu1 }
 0x2f3   : > { %v3614_v25 = vadd.f32 %v3613_v57, %v3612_v19  ;;  %3671 = vmatmul.mubr.bf16.gmra.mxu0 %v2754_v15  ;;  %v2746_v56 = vmax.f32 %v2717_v38, 0.0 }
 0x2f4   : > { %v3615_v6 = vpop.f32.mrf.mxu1  ;;  %3674 = vmatprep.mubr.msk.bf16.mxu0 %vm4418_vm1, %v4417_v0 }
 0x2f5   : > { %v2720_v8 = vadd.f32 %v3614_v25, %v2632_v36 }
 0x2f6   : > { %v3616_v59 = vpop.f32.mrf.mxu1 }
 0x2f7   : > { %v2747_v1 = vmax.f32 %v2720_v8, 0.0  ;;  %v3617_v50 = vadd.f32 %v3616_v59, %v3615_v6 }
 0x2f8   : > { %v3618_v46 = vpop.f32.mrf.mxu1 }
 0x2f9   : > { %v2755_v44 = vpack.c.bf16 %v2747_v1, %v2746_v56  ;;  %v2725_v28 = vadd.f32 %v3617_v50, %v2637_v5 }
 0x2fa   : > { %v3619_v60 = vpop.f32.mrf.mxu1 }
 0x2fb   : > { %v3620_v61 = vadd.f32 %v3619_v60, %v3618_v46  ;;  %3675 = vmatmul.mubr.bf16.gmra.mxu0 %v2755_v44  ;;  %v2748_v43 = vmax.f32 %v2725_v28, 0.0 }
 0x2fc   : > { %v3621_v48 = vpop.f32.mrf.mxu1  ;;  %3678 = vmatprep.mubr.msk.bf16.mxu0 %vm4418_vm1, %v4417_v0 }
 0x2fd   : > { %v2728_v14 = vadd.f32 %v3620_v61, %v2640_v9 }
 0x2fe   : > { %v3622_v20 = vpop.f32.mrf.mxu1 }
 0x2ff   : > { %v2749_v11 = vmax.f32 %v2728_v14, 0.0  ;;  %v3623_v37 = vadd.f32 %v3622_v20, %v3621_v48 }
 0x300   : > { %v3624_v17 = vpop.f32.mrf.mxu1 }
 0x301   : > { %v2756_v29 = vpack.c.bf16 %v2749_v11, %v2748_v43  ;;  %v2733_v41 = vadd.f32 %v3623_v37, %v2645_v62 }
 0x302   : > { %v3625_v42 = vpop.f32.mrf.mxu1 }
 0x303   : > { %3679 = vmatmul.mubr.bf16.gmra.mxu0 %v2756_v29  ;;  %v2750_v40 = vmax.f32 %v2733_v41, 0.0 }
 0x304   : > { %3682 = vmatprep.mubr.msk.bf16.mxu0 %vm4418_vm1, %v4417_v0 }
 0x305   : > { %v2757_v63 = vpack.c.bf16 %v2750_v40, %v2750_v40 }
 0x30b   : > { %3683 = vmatmul.mubr.bf16.gmra.mxu0 %v2757_v63 }
 0x39b   : > { %v2863_v12 = vpop.f32.mrf.mxu0 }
 0x39c   : > { %v2864_v24 = vadd.f32 %v3489_v3, %v2863_v12 }
 0x39d   : > { %v3660_v39 = vpop.f32.mrf.mxu0 }
 0x39e   : > { %2917 = vst [vmem:[%s5244_s14] sm:$0xff] %v2864_v24 }
 0x39f   : > { %v2866_v0 = vpop.f32.mrf.mxu0 }
 0x3a0   : > { %v2867_v30 = vadd.f32 %v3489_v3, %v2866_v0 }
 0x3a1   : > { %v3661_v47 = vpop.f32.mrf.mxu0 }
 0x3a2   : > { %2918 = vst [vmem:[%s5244_s14 + $0x8] sm:$0xff] %v2867_v30 }
 0x3a3   : > { %v2871_v2 = vpop.f32.mrf.mxu0 }
 0x3a4   : > { %v2872_v13 = vadd.f32 %v3489_v3, %v2871_v2 }
 0x3a5   : > { %v3664_v54 = vpop.f32.mrf.mxu0 }
 0x3a6   : > { %2919 = vst [vmem:[%s5244_s14 + $0x10] sm:$0xff] %v2872_v13 }
 0x3a7   : > { %v2874_v22 = vpop.f32.mrf.mxu0 }
 0x3a8   : > { %v2875_v49 = vadd.f32 %v3489_v3, %v2874_v22 }
 0x3a9   : > { %v3665_v23 = vpop.f32.mrf.mxu0 }
 0x3aa   : > { %2920 = vst [vmem:[%s5244_s14 + $0x18] sm:$0xff] %v2875_v49 }
 0x3ab   : > { %v2879_v33 = vpop.f32.mrf.mxu0 }
 0x3ac   : > { %v2880_v31 = vadd.f32 %v3489_v3, %v2879_v33 }
 0x3ad   : > { %v3668_v51 = vpop.f32.mrf.mxu0 }
 0x3ae   : > { %2921 = vst [vmem:[%s5244_s14 + $0x20] sm:$0xff] %v2880_v31 }
 0x3af   : > { %v2882_v4 = vpop.f32.mrf.mxu0 }
 0x3b0   : > { %v2883_v7 = vadd.f32 %v3489_v3, %v2882_v4 }
 0x3b1   : > { %v3669_v10 = vpop.f32.mrf.mxu0 }
 0x3b2   : > { %2922 = vst [vmem:[%s5244_s14 + $0x28] sm:$0xff] %v2883_v7 }
 0x3b3   : > { %v2887_v16 = vpop.f32.mrf.mxu0 }
 0x3b4   : > { %v2888_v45 = vadd.f32 %v3489_v3, %v2887_v16 }
 0x3b5   : > { %v3672_v35 = vpop.f32.mrf.mxu0 }
 0x3b6   : > { %2923 = vst [vmem:[%s5244_s14 + $0x30] sm:$0xff] %v2888_v45 }
 0x3b7   : > { %v2890_v53 = vpop.f32.mrf.mxu0 }
 0x3b8   : > { %v2891_v27 = vadd.f32 %v3489_v3, %v2890_v53 }
 0x3b9   : > { %v3673_v52 = vpop.f32.mrf.mxu0 }
 0x3ba   : > { %2924 = vst [vmem:[%s5244_s14 + $0x38] sm:$0xff] %v2891_v27 }
 0x3bb   : > { %v2895_v26 = vpop.f32.mrf.mxu0 }
 0x3bc   : > { %v2896_v55 = vadd.f32 %v3489_v3, %v2895_v26 }
 0x3bd   : > { %v3676_v18 = vpop.f32.mrf.mxu0 }
 0x3be   : > { %2925 = vst [vmem:[%s5244_s14 + $0x40] sm:$0xff] %v2896_v55 }
 0x3bf   : > { %v2898_v21 = vpop.f32.mrf.mxu0 }
 0x3c0   : > { %v2899_v58 = vadd.f32 %v3489_v3, %v2898_v21 }
 0x3c1   : > { %v3677_v32 = vpop.f32.mrf.mxu0 }
 0x3c2   : > { %2926 = vst [vmem:[%s5244_s14 + $0x48] sm:$0xff] %v2899_v58 }
 0x3c3   : > { %v2903_v19 = vpop.f32.mrf.mxu0 }
 0x3c4   : > { %v2904_v34 = vadd.f32 %v3489_v3, %v2903_v19 }
 0x3c5   : > { %v3680_v15 = vpop.f32.mrf.mxu0 }
 0x3c6   : > { %2927 = vst [vmem:[%s5244_s14 + $0x50] sm:$0xff] %v2904_v34 }
 0x3c7   : > { %v2906_v57 = vpop.f32.mrf.mxu0 }
 0x3c8   : > { %v2907_v36 = vadd.f32 %v3489_v3, %v2906_v57 }
 0x3c9   : > { %v3681_v38 = vpop.f32.mrf.mxu0 }
 0x3ca   : > { %2928 = vst [vmem:[%s5244_s14 + $0x58] sm:$0xff] %v2907_v36 }
 0x3cb   : > { %v2911_v25 = vpop.f32.mrf.mxu0 }
 0x3cc   : > { %v2912_v6 = vadd.f32 %v3489_v3, %v2911_v25 }
 0x3cd   : > { %v3684_v8 = vpop.f32.mrf.mxu0  ;;  %2936 = sbr.rel (!%p5390_p6) target bundleno = 1031 (0x407), region = 72 }
 0x3ce   : > { %2929 = vst [vmem:[%s5244_s14 + $0x60] sm:$0xff] %v2912_v6 }
 0x3cf   : > { %v2914_v59 = vpop.f32.mrf.mxu0 }
 0x3d1   : > { %v3685_v56 = vpop.f32.mrf.mxu0 }
 0x3d2   : > { %s5401_s30 = smov (!%p2939_p3, %s2938_s30), 13 }
 0x3d3   : > { %s3498_s15 = sshll.u32 %s5401_s30, 7 }
 0x3d4   : > { %p3501_p5 = scmp.eq.s32.totalorder %s3498_s15, 0 }
 0x3d5   : > { %4164 = sdivrem.u32 (!%p3501_p5), %s5401_s30, 13 }
 0x3d6   : > { %2947 = sbr.rel (%p3501_p5) target bundleno = 1031 (0x407), region = 76 }
 0x3de   : > { %s5272_s12 = spop.drf %4164 }
 0x3df   : > { %p3502_p8 = scmp.le.s32.totalorder %s5272_s12, 0 }
 0x3e0   : > { %s5391_s28 = smov (!%p3502_p8), %s5266_s24  ;;  %s5392_s17 = smov (!%p3502_p8), %s5244_s14 }
 0x3e1   : > { %3162 = sbr.rel (%p3502_p8) target bundleno = 1006 (0x3ee), region = 158  ;;  %s5281_s19 = smov (!%p3502_p8), 0  }
 0x3e2   : > { %s5283_s27 = smov (!%p3502_p8), 0  }
 0x3e6 LB: >> { %v3036_v1 = vld [vmem:[%s4380_s17] sm:$0xff]  ;;  %v3038_v50 = vld [vmem:[%s4380_s17 + $0x8] sm:$0xff]  ;;  %v3040_v46 = vld [vmem:[%s4380_s17 + $0x10] sm:$0xff]  ;;  %s3062_s20 = sadd.s32 1, %s4384_s19  ;;  %s3030_s27 = sadd.s32 1, %s4388_s27   ;;  %s4388_s27 = sphi %s5283_s27, %s3030_s27   ;;  %s4384_s19 = sphi %s5281_s19, %s5393_s19   ;;  %s4380_s17 = sphi %s5392_s17, %s3067_s17   ;;  %s4376_s28 = sphi %s5391_s28, %s3068_s28  }
 0x3e7   : >> { %3037 = vst [vmem:[%s4376_s28] sm:$0xff] %v3036_v1  ;;  %3039 = vst [vmem:[%s4376_s28 + $0x8] sm:$0xff] %v3038_v50  ;;  %v3042_v5 = vld [vmem:[%s4380_s17 + $0x18] sm:$0xff]  ;;  %v3044_v44 = vld [vmem:[%s4380_s17 + $0x20] sm:$0xff]  ;;  %p3063_p10 = scmp.ge.s32.totalorder %s3062_s20, %s5272_s12  ;;  %p3029_p0 = scmp.ge.s32.totalorder %s3030_s27, %s5272_s12 }
 0x3e8   : >> { %3041 = vst [vmem:[%s4376_s28 + $0x10] sm:$0xff] %v3040_v46  ;;  %v3046_v60 = vld [vmem:[%s4380_s17 + $0x28] sm:$0xff]  ;;  %3043 = vst [vmem:[%s4376_s28 + $0x18] sm:$0xff] %v3042_v5  ;;  %v3048_v9 = vld [vmem:[%s4380_s17 + $0x30] sm:$0xff] }
 0x3e9   : >> { %3045 = vst [vmem:[%s4376_s28 + $0x20] sm:$0xff] %v3044_v44  ;;  %3047 = vst [vmem:[%s4376_s28 + $0x28] sm:$0xff] %v3046_v60  ;;  %v3050_v28 = vld [vmem:[%s4380_s17 + $0x38] sm:$0xff]  ;;  %v3052_v61 = vld [vmem:[%s4380_s17 + $0x40] sm:$0xff]  ;;  %s5403_s20 = smov (%p3063_p10, %s3062_s20), 0  ;;  %3032 = sbr.rel (!%p3029_p0) target bundleno = 998 (0x3e6), region = 164 }
 0x3ea   : >> { %3049 = vst [vmem:[%s4376_s28 + $0x30] sm:$0xff] %v3048_v9  ;;  %3051 = vst [vmem:[%s4376_s28 + $0x38] sm:$0xff] %v3050_v28  ;;  %v3054_v48 = vld [vmem:[%s4380_s17 + $0x48] sm:$0xff]  ;;  %v3056_v14 = vld [vmem:[%s4380_s17 + $0x50] sm:$0xff]  ;;  %s3065_s11 = smul.u32 104, %s5403_s20  ;;  %s5393_s19 = smov %s5403_s20 }
 0x3eb   : >> { %3053 = vst [vmem:[%s4376_s28 + $0x40] sm:$0xff] %v3052_v61  ;;  %v3058_v20 = vld [vmem:[%s4380_s17 + $0x58] sm:$0xff]  ;;  %3055 = vst [vmem:[%s4376_s28 + $0x48] sm:$0xff] %v3054_v48  ;;  %v3060_v62 = vld [vmem:[%s4380_s17 + $0x60] sm:$0xff] }
 0x3ec   : >> { %3057 = vst [vmem:[%s4376_s28 + $0x50] sm:$0xff] %v3056_v14  ;;  %3059 = vst [vmem:[%s4376_s28 + $0x58] sm:$0xff] %v3058_v20  ;;  %s3067_s17 = scalar_lea.vmem %s5244_s14, %s3065_s11 [#allocation10]  }
 0x3ed   : >> { %3061 = vst [vmem:[%s4376_s28 + $0x60] sm:$0xff] %v3060_v62  ;;  %s3068_s28 = scalar_lea.vmem %s5266_s24, %s3065_s11  }
 0x3ee PF: > { %4166 = sdivrem.u32 %s5401_s30, 13 }
 0x3ef   : > { %s3503_s13 = smul.u32 104, %s5272_s12 }
 0x3f1   : > { %s3073_s16 = scalar_lea.vmem %s5244_s14, %s3503_s13 [#allocation10]   ;;  %s3075_s23 = scalar_lea.vmem %s5266_s24, %s3503_s13  }
 0x3f7   : > { %s4167_s8 = spop.drf %4166 }
 0x3f8   : > { %p3505_p4 = scmp.le.s32.totalorder %s4167_s8, 0 }
 0x3f9   : > { %s4390_s22 = smov (!%p3505_p4), %s3075_s23   ;;  %s4394_s18 = smov (!%p3505_p4), %s3073_s16  }
 0x3fa   : > { %3176 = sbr.rel (%p3505_p4) target bundleno = 1031 (0x407), region = 169  ;;  %s4398_s10 = smov (!%p3505_p4), 0  }
 0x3fb   : > { %s4402_s21 = smov (!%p3505_p4), 0  }
 0x3ff LB: >> { %v3085_v43 = vld [vmem:[%s4396_s18] sm:$0xff]  ;;  %s3087_s15 = sadd.s32 1, %s4400_s10  ;;  %s3079_s21 = sadd.s32 1, %s4404_s21   ;;  %s4404_s21 = sphi %s4402_s21, %s3079_s21   ;;  %s4400_s10 = sphi %s4398_s10, %s4399_s10   ;;  %s4396_s18 = sphi %s4394_s18, %s3092_s18   ;;  %s4392_s22 = sphi %s4390_s22, %s3093_s22  }
 0x400   : >> { %3086 = vst [vmem:[%s4392_s22] sm:$0xff] %v3085_v43  ;;  %p3088_p13 = scmp.ge.s32.totalorder %s3087_s15, %s4167_s8  ;;  %p3078_p7 = scmp.ge.s32.totalorder %s3079_s21, %s4167_s8 }
 0x402   : >> { %s5405_s15 = smov (%p3088_p13, %s3087_s15), 0  ;;  %3081 = sbr.rel (!%p3078_p7) target bundleno = 1023 (0x3ff), region = 175 }
 0x403   : >> { %s3506_s14 = sshll.u32 %s5405_s15, 3  ;;  %s4399_s10 = smov %s5405_s15  }
 0x404   : >> { %s3092_s18 = scalar_lea.vmem %s3073_s16, %s3506_s14 [#allocation10]   ;;  %s3093_s22 = scalar_lea.vmem %s3075_s23, %s3506_s14  }
 0x407 PF: > { %p19_p9 = scmp.ge.s32.totalorder %s4481_s29, 4   ;;  %s5394_s24 = smov %s4364_s25 }
 0x408   : > { %s5395_s25 = smov %s4368_s26  ;;  %s5396_s26 = smov %s4491_s9 }
 0x409   : > { %s5397_s27 = smov %s4481_s29  ;;  %21 = sbr.rel (!%p19_p9) target bundleno = 5 (0x5), region = 186 }
 0x40e   :  { %3109 = vsyncpa [#allocation3], 1 }
 0x40f   :  { %3111 = vsyncpa [#allocation3 + $0x1], 1 }
 0x410   :  { %3112 = vsyncpa [#allocation5], 1 }
 0x411   :  { %3113 = vsyncpa [#allocation8], 1 }

</bundles_post_ra>
